<compile_context>
chip_gen: v7x
topology: tpu7x:2x2x1
jax: 0.10.0
libtpu: 0.0.40
codegen_flags: <defaults>
</compile_context>

<pallas_src>
import jax
import jax.numpy as jnp
from jax.experimental import pallas as pl
from jax.experimental.pallas import tpu as pltpu

IN_F, HID_F, OUT_F = 13, 6, 3


def _linear_model_kernel(x_ref, w1_ref, b1_ref, w2_ref, b2_ref, o_ref):
    # x_ref : (13, 8, TQ) f32 VMEM   -- feature k lives at x_ref[k], a full (8, TQ) slab
    # w1_ref: (6, 13) SMEM   b1_ref: (6,) SMEM
    # w2_ref: (3, 6)  SMEM   b2_ref: (3,) SMEM
    # o_ref : (3, 8, TQ) f32 VMEM    -- class c lives at o_ref[c]
    x = [x_ref[k] for k in range(IN_F)]            # 13 x (8, TQ), full vreg tiles

    # Linear_1 + Sigmoid fused with Linear_2 accumulation: each hidden unit is
    # produced and immediately consumed, keeping the live set small.
    acc2 = [None] * OUT_F
    for j in range(HID_F):
        s = x[0] * w1_ref[j, 0]
        for k in range(1, IN_F):
            s = s + x[k] * w1_ref[j, k]
        h_j = jax.nn.sigmoid(s + b1_ref[j])        # EUP
        for c in range(OUT_F):
            t = h_j * w2_ref[c, j]
            acc2[c] = t if j == 0 else acc2[c] + t

    z = [acc2[c] + b2_ref[c] for c in range(OUT_F)]

    # softmax over the 3 class slabs: purely elementwise per batch element,
    # no cross-lane / cross-sublane reductions needed in this layout.
    z_max = jnp.maximum(jnp.maximum(z[0], z[1]), z[2])
    e = [jnp.exp(zc - z_max) for zc in z]          # EUP
    denom = e[0] + e[1] + e[2]
    inv = pl.reciprocal(denom, approx=True)        # EUP slot
    inv = inv * (2.0 - denom * inv)                # one Newton step -> ~f32 accurate

    for c in range(OUT_F):
        o_ref[c] = (e[c] * inv).astype(o_ref.dtype)


def linear_model_forward(x, w1, b1, w2, b2, *, tile_n=2048):
    """x: (N, 13); w1: (6, 13); b1: (6,); w2: (3, 6); b2: (3,)  ->  (N, 3)."""
    n = x.shape[0]
    if n <= tile_n:
        tile = ((max(n, 1) + 7) // 8) * 8          # single full-extent tile
    else:
        assert tile_n % 1024 == 0, "tile_n must be a multiple of 1024"
        tile = tile_n                              # -> tile_q is a multiple of 128
    n_pad = ((n + tile - 1) // tile) * tile
    n_tiles = n_pad // tile
    tile_q = tile // 8
    npq = n_pad // 8

    xf = x.astype(jnp.float32)
    if n_pad != n:
        xf = jnp.pad(xf, ((0, n_pad - n), (0, 0)))
    # (n_pad, 13) -> (13, 8, n_pad//8): batch index b = 8*q + r lives at [:, r, q],
    # so every feature the kernel reads is a dense (8, tile_q) sublane x lane slab.
    xt = xf.reshape(npq, 8, IN_F).transpose(2, 1, 0)

    smem = pl.BlockSpec(memory_space=pltpu.MemorySpace.SMEM)

    out3 = pl.pallas_call(
        _linear_model_kernel,
        out_shape=jax.ShapeDtypeStruct((OUT_F, 8, npq), jnp.float32),
        grid=(n_tiles,),
        in_specs=[
            pl.BlockSpec((IN_F, 8, tile_q), lambda i: (0, 0, i)),  # x tile, pipelined
            smem, smem, smem, smem,                                # params stay resident
        ],
        out_specs=pl.BlockSpec((OUT_F, 8, tile_q), lambda i: (0, 0, i)),
        compiler_params=pltpu.CompilerParams(
            dimension_semantics=("parallel",),
        ),
    )(xt,
      w1.astype(jnp.float32), b1.astype(jnp.float32),
      w2.astype(jnp.float32), b2.astype(jnp.float32))

    # (3, 8, npq) -> (n_pad, 3); drop batch padding -> PyTorch's (N, 3) convention.
    out = out3.transpose(2, 1, 0).reshape(n_pad, OUT_F)
    return out[:n]


def _reference(x, w1, b1, w2, b2):
    hp = jax.lax.Precision.HIGHEST
    h = jax.nn.sigmoid(jnp.dot(x, w1.T, precision=hp) + b1)
    z = jnp.dot(h, w2.T, precision=hp) + b2
    return jax.nn.softmax(z, axis=1)


if __name__ == "__main__":
    key = jax.random.PRNGKey(0)
    k_x, k_w1, k_b1, k_w2, k_b2 = jax.random.split(key, 5)

    N = 8
    x = jax.random.normal(k_x, (N, IN_F), dtype=jnp.float32)
    # Deterministic "PyTorch-like" uniform init: U(-1/sqrt(fan_in), 1/sqrt(fan_in))
    w1 = jax.random.uniform(k_w1, (HID_F, IN_F), jnp.float32,
                            minval=-1.0 / IN_F ** 0.5, maxval=1.0 / IN_F ** 0.5)
    b1 = jax.random.uniform(k_b1, (HID_F,), jnp.float32,
                            minval=-1.0 / IN_F ** 0.5, maxval=1.0 / IN_F ** 0.5)
    w2 = jax.random.uniform(k_w2, (OUT_F, HID_F), jnp.float32,
                            minval=-1.0 / HID_F ** 0.5, maxval=1.0 / HID_F ** 0.5)
    b2 = jax.random.uniform(k_b2, (OUT_F,), jnp.float32,
                            minval=-1.0 / HID_F ** 0.5, maxval=1.0 / HID_F ** 0.5)

    out = jax.jit(linear_model_forward)(x, w1, b1, w2, b2)
    out = jax.block_until_ready(out)

    ref = _reference(x, w1, b1, w2, b2)
    assert out.shape == (N, OUT_F)
    assert jnp.allclose(out, ref, atol=1e-5, rtol=1e-5), "mismatch vs reference"

    print("KERNEL_OK")
</pallas_src>

<mosaic_0001>
module attributes {stable_mosaic.version = 11 : i64} {
  func.func @_linear_model_kernel(%arg0: i32, %arg1: memref<13x8x1xf32, #tpu.memory_space<vmem>>, %arg2: memref<6x13xf32, #tpu.memory_space<smem>>, %arg3: memref<6xf32, #tpu.memory_space<smem>>, %arg4: memref<3x6xf32, #tpu.memory_space<smem>>, %arg5: memref<3xf32, #tpu.memory_space<smem>>, %arg6: memref<3x8x1xf32, #tpu.memory_space<vmem>>) attributes {dimension_semantics = [#tpu.dimension_semantics<parallel>], iteration_bounds = array<i64: 1>, scalar_prefetch = 0 : i64, scratch_operands = 0 : i64, tpu.core_type = #tpu.core_type<tc>, window_params = [{transform_indices = @transform_0, window_bounds = array<i64: 13, 8, 1>}, {transform_indices = @transform_1, window_bounds = array<i64: 6, 13>}, {transform_indices = @transform_2, window_bounds = array<i64: 6>}, {transform_indices = @transform_3, window_bounds = array<i64: 3, 6>}, {transform_indices = @transform_4, window_bounds = array<i64: 3>}, {transform_indices = @transform_5, window_bounds = array<i64: 3, 8, 1>}]} {
    %c0 = arith.constant 0 : index
    %c0_0 = arith.constant 0 : index
    %c0_1 = arith.constant 0 : index
    %0 = vector.load %arg1[%c0, %c0_0, %c0_1] : memref<13x8x1xf32, #tpu.memory_space<vmem>>, vector<1x8x1xf32>
    %1 = vector.shape_cast %0 : vector<1x8x1xf32> to vector<8x1xf32>
    %c1 = arith.constant 1 : index
    %c0_2 = arith.constant 0 : index
    %c0_3 = arith.constant 0 : index
    %2 = vector.load %arg1[%c1, %c0_2, %c0_3] : memref<13x8x1xf32, #tpu.memory_space<vmem>>, vector<1x8x1xf32>
    %3 = vector.shape_cast %2 : vector<1x8x1xf32> to vector<8x1xf32>
    %c2 = arith.constant 2 : index
    %c0_4 = arith.constant 0 : index
    %c0_5 = arith.constant 0 : index
    %4 = vector.load %arg1[%c2, %c0_4, %c0_5] : memref<13x8x1xf32, #tpu.memory_space<vmem>>, vector<1x8x1xf32>
    %5 = vector.shape_cast %4 : vector<1x8x1xf32> to vector<8x1xf32>
    %c3 = arith.constant 3 : index
    %c0_6 = arith.constant 0 : index
    %c0_7 = arith.constant 0 : index
    %6 = vector.load %arg1[%c3, %c0_6, %c0_7] : memref<13x8x1xf32, #tpu.memory_space<vmem>>, vector<1x8x1xf32>
    %7 = vector.shape_cast %6 : vector<1x8x1xf32> to vector<8x1xf32>
    %c4 = arith.constant 4 : index
    %c0_8 = arith.constant 0 : index
    %c0_9 = arith.constant 0 : index
    %8 = vector.load %arg1[%c4, %c0_8, %c0_9] : memref<13x8x1xf32, #tpu.memory_space<vmem>>, vector<1x8x1xf32>
    %9 = vector.shape_cast %8 : vector<1x8x1xf32> to vector<8x1xf32>
    %c5 = arith.constant 5 : index
    %c0_10 = arith.constant 0 : index
    %c0_11 = arith.constant 0 : index
    %10 = vector.load %arg1[%c5, %c0_10, %c0_11] : memref<13x8x1xf32, #tpu.memory_space<vmem>>, vector<1x8x1xf32>
    %11 = vector.shape_cast %10 : vector<1x8x1xf32> to vector<8x1xf32>
    %c6 = arith.constant 6 : index
    %c0_12 = arith.constant 0 : index
    %c0_13 = arith.constant 0 : index
    %12 = vector.load %arg1[%c6, %c0_12, %c0_13] : memref<13x8x1xf32, #tpu.memory_space<vmem>>, vector<1x8x1xf32>
    %13 = vector.shape_cast %12 : vector<1x8x1xf32> to vector<8x1xf32>
    %c7 = arith.constant 7 : index
    %c0_14 = arith.constant 0 : index
    %c0_15 = arith.constant 0 : index
    %14 = vector.load %arg1[%c7, %c0_14, %c0_15] : memref<13x8x1xf32, #tpu.memory_space<vmem>>, vector<1x8x1xf32>
    %15 = vector.shape_cast %14 : vector<1x8x1xf32> to vector<8x1xf32>
    %c8 = arith.constant 8 : index
    %c0_16 = arith.constant 0 : index
    %c0_17 = arith.constant 0 : index
    %16 = vector.load %arg1[%c8, %c0_16, %c0_17] : memref<13x8x1xf32, #tpu.memory_space<vmem>>, vector<1x8x1xf32>
    %17 = vector.shape_cast %16 : vector<1x8x1xf32> to vector<8x1xf32>
    %c9 = arith.constant 9 : index
    %c0_18 = arith.constant 0 : index
    %c0_19 = arith.constant 0 : index
    %18 = vector.load %arg1[%c9, %c0_18, %c0_19] : memref<13x8x1xf32, #tpu.memory_space<vmem>>, vector<1x8x1xf32>
    %19 = vector.shape_cast %18 : vector<1x8x1xf32> to vector<8x1xf32>
    %c10 = arith.constant 10 : index
    %c0_20 = arith.constant 0 : index
    %c0_21 = arith.constant 0 : index
    %20 = vector.load %arg1[%c10, %c0_20, %c0_21] : memref<13x8x1xf32, #tpu.memory_space<vmem>>, vector<1x8x1xf32>
    %21 = vector.shape_cast %20 : vector<1x8x1xf32> to vector<8x1xf32>
    %c11 = arith.constant 11 : index
    %c0_22 = arith.constant 0 : index
    %c0_23 = arith.constant 0 : index
    %22 = vector.load %arg1[%c11, %c0_22, %c0_23] : memref<13x8x1xf32, #tpu.memory_space<vmem>>, vector<1x8x1xf32>
    %23 = vector.shape_cast %22 : vector<1x8x1xf32> to vector<8x1xf32>
    %c12 = arith.constant 12 : index
    %c0_24 = arith.constant 0 : index
    %c0_25 = arith.constant 0 : index
    %24 = vector.load %arg1[%c12, %c0_24, %c0_25] : memref<13x8x1xf32, #tpu.memory_space<vmem>>, vector<1x8x1xf32>
    %25 = vector.shape_cast %24 : vector<1x8x1xf32> to vector<8x1xf32>
    %c0_26 = arith.constant 0 : index
    %c0_27 = arith.constant 0 : index
    %26 = memref.load %arg2[%c0_26, %c0_27] : memref<6x13xf32, #tpu.memory_space<smem>>
    %27 = vector.broadcast %26 : f32 to vector<8x1xf32>
    %28 = arith.mulf %1, %27 : vector<8x1xf32>
    %c0_28 = arith.constant 0 : index
    %c1_29 = arith.constant 1 : index
    %29 = memref.load %arg2[%c0_28, %c1_29] : memref<6x13xf32, #tpu.memory_space<smem>>
    %30 = vector.broadcast %29 : f32 to vector<8x1xf32>
    %31 = arith.mulf %3, %30 : vector<8x1xf32>
    %32 = arith.addf %28, %31 : vector<8x1xf32>
    %c0_30 = arith.constant 0 : index
    %c2_31 = arith.constant 2 : index
    %33 = memref.load %arg2[%c0_30, %c2_31] : memref<6x13xf32, #tpu.memory_space<smem>>
    %34 = vector.broadcast %33 : f32 to vector<8x1xf32>
    %35 = arith.mulf %5, %34 : vector<8x1xf32>
    %36 = arith.addf %32, %35 : vector<8x1xf32>
    %c0_32 = arith.constant 0 : index
    %c3_33 = arith.constant 3 : index
    %37 = memref.load %arg2[%c0_32, %c3_33] : memref<6x13xf32, #tpu.memory_space<smem>>
    %38 = vector.broadcast %37 : f32 to vector<8x1xf32>
    %39 = arith.mulf %7, %38 : vector<8x1xf32>
    %40 = arith.addf %36, %39 : vector<8x1xf32>
    %c0_34 = arith.constant 0 : index
    %c4_35 = arith.constant 4 : index
    %41 = memref.load %arg2[%c0_34, %c4_35] : memref<6x13xf32, #tpu.memory_space<smem>>
    %42 = vector.broadcast %41 : f32 to vector<8x1xf32>
    %43 = arith.mulf %9, %42 : vector<8x1xf32>
    %44 = arith.addf %40, %43 : vector<8x1xf32>
    %c0_36 = arith.constant 0 : index
    %c5_37 = arith.constant 5 : index
    %45 = memref.load %arg2[%c0_36, %c5_37] : memref<6x13xf32, #tpu.memory_space<smem>>
    %46 = vector.broadcast %45 : f32 to vector<8x1xf32>
    %47 = arith.mulf %11, %46 : vector<8x1xf32>
    %48 = arith.addf %44, %47 : vector<8x1xf32>
    %c0_38 = arith.constant 0 : index
    %c6_39 = arith.constant 6 : index
    %49 = memref.load %arg2[%c0_38, %c6_39] : memref<6x13xf32, #tpu.memory_space<smem>>
    %50 = vector.broadcast %49 : f32 to vector<8x1xf32>
    %51 = arith.mulf %13, %50 : vector<8x1xf32>
    %52 = arith.addf %48, %51 : vector<8x1xf32>
    %c0_40 = arith.constant 0 : index
    %c7_41 = arith.constant 7 : index
    %53 = memref.load %arg2[%c0_40, %c7_41] : memref<6x13xf32, #tpu.memory_space<smem>>
    %54 = vector.broadcast %53 : f32 to vector<8x1xf32>
    %55 = arith.mulf %15, %54 : vector<8x1xf32>
    %56 = arith.addf %52, %55 : vector<8x1xf32>
    %c0_42 = arith.constant 0 : index
    %c8_43 = arith.constant 8 : index
    %57 = memref.load %arg2[%c0_42, %c8_43] : memref<6x13xf32, #tpu.memory_space<smem>>
    %58 = vector.broadcast %57 : f32 to vector<8x1xf32>
    %59 = arith.mulf %17, %58 : vector<8x1xf32>
    %60 = arith.addf %56, %59 : vector<8x1xf32>
    %c0_44 = arith.constant 0 : index
    %c9_45 = arith.constant 9 : index
    %61 = memref.load %arg2[%c0_44, %c9_45] : memref<6x13xf32, #tpu.memory_space<smem>>
    %62 = vector.broadcast %61 : f32 to vector<8x1xf32>
    %63 = arith.mulf %19, %62 : vector<8x1xf32>
    %64 = arith.addf %60, %63 : vector<8x1xf32>
    %c0_46 = arith.constant 0 : index
    %c10_47 = arith.constant 10 : index
    %65 = memref.load %arg2[%c0_46, %c10_47] : memref<6x13xf32, #tpu.memory_space<smem>>
    %66 = vector.broadcast %65 : f32 to vector<8x1xf32>
    %67 = arith.mulf %21, %66 : vector<8x1xf32>
    %68 = arith.addf %64, %67 : vector<8x1xf32>
    %c0_48 = arith.constant 0 : index
    %c11_49 = arith.constant 11 : index
    %69 = memref.load %arg2[%c0_48, %c11_49] : memref<6x13xf32, #tpu.memory_space<smem>>
    %70 = vector.broadcast %69 : f32 to vector<8x1xf32>
    %71 = arith.mulf %23, %70 : vector<8x1xf32>
    %72 = arith.addf %68, %71 : vector<8x1xf32>
    %c0_50 = arith.constant 0 : index
    %c12_51 = arith.constant 12 : index
    %73 = memref.load %arg2[%c0_50, %c12_51] : memref<6x13xf32, #tpu.memory_space<smem>>
    %74 = vector.broadcast %73 : f32 to vector<8x1xf32>
    %75 = arith.mulf %25, %74 : vector<8x1xf32>
    %76 = arith.addf %72, %75 : vector<8x1xf32>
    %c0_52 = arith.constant 0 : index
    %77 = memref.load %arg3[%c0_52] : memref<6xf32, #tpu.memory_space<smem>>
    %78 = vector.broadcast %77 : f32 to vector<8x1xf32>
    %79 = arith.addf %76, %78 : vector<8x1xf32>
    %80 = arith.negf %79 : vector<8x1xf32>
    %81 = math.exp %80 : vector<8x1xf32>
    %cst = arith.constant 1.000000e+00 : f32
    %82 = vector.broadcast %cst : f32 to vector<8x1xf32>
    %83 = arith.addf %82, %81 : vector<8x1xf32>
    %84 = arith.divf %82, %83 : vector<8x1xf32>
    %c0_53 = arith.constant 0 : index
    %c0_54 = arith.constant 0 : index
    %85 = memref.load %arg4[%c0_53, %c0_54] : memref<3x6xf32, #tpu.memory_space<smem>>
    %86 = vector.broadcast %85 : f32 to vector<8x1xf32>
    %87 = arith.mulf %84, %86 : vector<8x1xf32>
    %c1_55 = arith.constant 1 : index
    %c0_56 = arith.constant 0 : index
    %88 = memref.load %arg4[%c1_55, %c0_56] : memref<3x6xf32, #tpu.memory_space<smem>>
    %89 = vector.broadcast %88 : f32 to vector<8x1xf32>
    %90 = arith.mulf %84, %89 : vector<8x1xf32>
    %c2_57 = arith.constant 2 : index
    %c0_58 = arith.constant 0 : index
    %91 = memref.load %arg4[%c2_57, %c0_58] : memref<3x6xf32, #tpu.memory_space<smem>>
    %92 = vector.broadcast %91 : f32 to vector<8x1xf32>
    %93 = arith.mulf %84, %92 : vector<8x1xf32>
    %c1_59 = arith.constant 1 : index
    %c0_60 = arith.constant 0 : index
    %94 = memref.load %arg2[%c1_59, %c0_60] : memref<6x13xf32, #tpu.memory_space<smem>>
    %95 = vector.broadcast %94 : f32 to vector<8x1xf32>
    %96 = arith.mulf %1, %95 : vector<8x1xf32>
    %c1_61 = arith.constant 1 : index
    %c1_62 = arith.constant 1 : index
    %97 = memref.load %arg2[%c1_61, %c1_62] : memref<6x13xf32, #tpu.memory_space<smem>>
    %98 = vector.broadcast %97 : f32 to vector<8x1xf32>
    %99 = arith.mulf %3, %98 : vector<8x1xf32>
    %100 = arith.addf %96, %99 : vector<8x1xf32>
    %c1_63 = arith.constant 1 : index
    %c2_64 = arith.constant 2 : index
    %101 = memref.load %arg2[%c1_63, %c2_64] : memref<6x13xf32, #tpu.memory_space<smem>>
    %102 = vector.broadcast %101 : f32 to vector<8x1xf32>
    %103 = arith.mulf %5, %102 : vector<8x1xf32>
    %104 = arith.addf %100, %103 : vector<8x1xf32>
    %c1_65 = arith.constant 1 : index
    %c3_66 = arith.constant 3 : index
    %105 = memref.load %arg2[%c1_65, %c3_66] : memref<6x13xf32, #tpu.memory_space<smem>>
    %106 = vector.broadcast %105 : f32 to vector<8x1xf32>
    %107 = arith.mulf %7, %106 : vector<8x1xf32>
    %108 = arith.addf %104, %107 : vector<8x1xf32>
    %c1_67 = arith.constant 1 : index
    %c4_68 = arith.constant 4 : index
    %109 = memref.load %arg2[%c1_67, %c4_68] : memref<6x13xf32, #tpu.memory_space<smem>>
    %110 = vector.broadcast %109 : f32 to vector<8x1xf32>
    %111 = arith.mulf %9, %110 : vector<8x1xf32>
    %112 = arith.addf %108, %111 : vector<8x1xf32>
    %c1_69 = arith.constant 1 : index
    %c5_70 = arith.constant 5 : index
    %113 = memref.load %arg2[%c1_69, %c5_70] : memref<6x13xf32, #tpu.memory_space<smem>>
    %114 = vector.broadcast %113 : f32 to vector<8x1xf32>
    %115 = arith.mulf %11, %114 : vector<8x1xf32>
    %116 = arith.addf %112, %115 : vector<8x1xf32>
    %c1_71 = arith.constant 1 : index
    %c6_72 = arith.constant 6 : index
    %117 = memref.load %arg2[%c1_71, %c6_72] : memref<6x13xf32, #tpu.memory_space<smem>>
    %118 = vector.broadcast %117 : f32 to vector<8x1xf32>
    %119 = arith.mulf %13, %118 : vector<8x1xf32>
    %120 = arith.addf %116, %119 : vector<8x1xf32>
    %c1_73 = arith.constant 1 : index
    %c7_74 = arith.constant 7 : index
    %121 = memref.load %arg2[%c1_73, %c7_74] : memref<6x13xf32, #tpu.memory_space<smem>>
    %122 = vector.broadcast %121 : f32 to vector<8x1xf32>
    %123 = arith.mulf %15, %122 : vector<8x1xf32>
    %124 = arith.addf %120, %123 : vector<8x1xf32>
    %c1_75 = arith.constant 1 : index
    %c8_76 = arith.constant 8 : index
    %125 = memref.load %arg2[%c1_75, %c8_76] : memref<6x13xf32, #tpu.memory_space<smem>>
    %126 = vector.broadcast %125 : f32 to vector<8x1xf32>
    %127 = arith.mulf %17, %126 : vector<8x1xf32>
    %128 = arith.addf %124, %127 : vector<8x1xf32>
    %c1_77 = arith.constant 1 : index
    %c9_78 = arith.constant 9 : index
    %129 = memref.load %arg2[%c1_77, %c9_78] : memref<6x13xf32, #tpu.memory_space<smem>>
    %130 = vector.broadcast %129 : f32 to vector<8x1xf32>
    %131 = arith.mulf %19, %130 : vector<8x1xf32>
    %132 = arith.addf %128, %131 : vector<8x1xf32>
    %c1_79 = arith.constant 1 : index
    %c10_80 = arith.constant 10 : index
    %133 = memref.load %arg2[%c1_79, %c10_80] : memref<6x13xf32, #tpu.memory_space<smem>>
    %134 = vector.broadcast %133 : f32 to vector<8x1xf32>
    %135 = arith.mulf %21, %134 : vector<8x1xf32>
    %136 = arith.addf %132, %135 : vector<8x1xf32>
    %c1_81 = arith.constant 1 : index
    %c11_82 = arith.constant 11 : index
    %137 = memref.load %arg2[%c1_81, %c11_82] : memref<6x13xf32, #tpu.memory_space<smem>>
    %138 = vector.broadcast %137 : f32 to vector<8x1xf32>
    %139 = arith.mulf %23, %138 : vector<8x1xf32>
    %140 = arith.addf %136, %139 : vector<8x1xf32>
    %c1_83 = arith.constant 1 : index
    %c12_84 = arith.constant 12 : index
    %141 = memref.load %arg2[%c1_83, %c12_84] : memref<6x13xf32, #tpu.memory_space<smem>>
    %142 = vector.broadcast %141 : f32 to vector<8x1xf32>
    %143 = arith.mulf %25, %142 : vector<8x1xf32>
    %144 = arith.addf %140, %143 : vector<8x1xf32>
    %c1_85 = arith.constant 1 : index
    %145 = memref.load %arg3[%c1_85] : memref<6xf32, #tpu.memory_space<smem>>
    %146 = vector.broadcast %145 : f32 to vector<8x1xf32>
    %147 = arith.addf %144, %146 : vector<8x1xf32>
    %148 = arith.negf %147 : vector<8x1xf32>
    %149 = math.exp %148 : vector<8x1xf32>
    %cst_86 = arith.constant 1.000000e+00 : f32
    %150 = vector.broadcast %cst_86 : f32 to vector<8x1xf32>
    %151 = arith.addf %150, %149 : vector<8x1xf32>
    %152 = arith.divf %150, %151 : vector<8x1xf32>
    %c0_87 = arith.constant 0 : index
    %c1_88 = arith.constant 1 : index
    %153 = memref.load %arg4[%c0_87, %c1_88] : memref<3x6xf32, #tpu.memory_space<smem>>
    %154 = vector.broadcast %153 : f32 to vector<8x1xf32>
    %155 = arith.mulf %152, %154 : vector<8x1xf32>
    %156 = arith.addf %87, %155 : vector<8x1xf32>
    %c1_89 = arith.constant 1 : index
    %c1_90 = arith.constant 1 : index
    %157 = memref.load %arg4[%c1_89, %c1_90] : memref<3x6xf32, #tpu.memory_space<smem>>
    %158 = vector.broadcast %157 : f32 to vector<8x1xf32>
    %159 = arith.mulf %152, %158 : vector<8x1xf32>
    %160 = arith.addf %90, %159 : vector<8x1xf32>
    %c2_91 = arith.constant 2 : index
    %c1_92 = arith.constant 1 : index
    %161 = memref.load %arg4[%c2_91, %c1_92] : memref<3x6xf32, #tpu.memory_space<smem>>
    %162 = vector.broadcast %161 : f32 to vector<8x1xf32>
    %163 = arith.mulf %152, %162 : vector<8x1xf32>
    %164 = arith.addf %93, %163 : vector<8x1xf32>
    %c2_93 = arith.constant 2 : index
    %c0_94 = arith.constant 0 : index
    %165 = memref.load %arg2[%c2_93, %c0_94] : memref<6x13xf32, #tpu.memory_space<smem>>
    %166 = vector.broadcast %165 : f32 to vector<8x1xf32>
    %167 = arith.mulf %1, %166 : vector<8x1xf32>
    %c2_95 = arith.constant 2 : index
    %c1_96 = arith.constant 1 : index
    %168 = memref.load %arg2[%c2_95, %c1_96] : memref<6x13xf32, #tpu.memory_space<smem>>
    %169 = vector.broadcast %168 : f32 to vector<8x1xf32>
    %170 = arith.mulf %3, %169 : vector<8x1xf32>
    %171 = arith.addf %167, %170 : vector<8x1xf32>
    %c2_97 = arith.constant 2 : index
    %c2_98 = arith.constant 2 : index
    %172 = memref.load %arg2[%c2_97, %c2_98] : memref<6x13xf32, #tpu.memory_space<smem>>
    %173 = vector.broadcast %172 : f32 to vector<8x1xf32>
    %174 = arith.mulf %5, %173 : vector<8x1xf32>
    %175 = arith.addf %171, %174 : vector<8x1xf32>
    %c2_99 = arith.constant 2 : index
    %c3_100 = arith.constant 3 : index
    %176 = memref.load %arg2[%c2_99, %c3_100] : memref<6x13xf32, #tpu.memory_space<smem>>
    %177 = vector.broadcast %176 : f32 to vector<8x1xf32>
    %178 = arith.mulf %7, %177 : vector<8x1xf32>
    %179 = arith.addf %175, %178 : vector<8x1xf32>
    %c2_101 = arith.constant 2 : index
    %c4_102 = arith.constant 4 : index
    %180 = memref.load %arg2[%c2_101, %c4_102] : memref<6x13xf32, #tpu.memory_space<smem>>
    %181 = vector.broadcast %180 : f32 to vector<8x1xf32>
    %182 = arith.mulf %9, %181 : vector<8x1xf32>
    %183 = arith.addf %179, %182 : vector<8x1xf32>
    %c2_103 = arith.constant 2 : index
    %c5_104 = arith.constant 5 : index
    %184 = memref.load %arg2[%c2_103, %c5_104] : memref<6x13xf32, #tpu.memory_space<smem>>
    %185 = vector.broadcast %184 : f32 to vector<8x1xf32>
    %186 = arith.mulf %11, %185 : vector<8x1xf32>
    %187 = arith.addf %183, %186 : vector<8x1xf32>
    %c2_105 = arith.constant 2 : index
    %c6_106 = arith.constant 6 : index
    %188 = memref.load %arg2[%c2_105, %c6_106] : memref<6x13xf32, #tpu.memory_space<smem>>
    %189 = vector.broadcast %188 : f32 to vector<8x1xf32>
    %190 = arith.mulf %13, %189 : vector<8x1xf32>
    %191 = arith.addf %187, %190 : vector<8x1xf32>
    %c2_107 = arith.constant 2 : index
    %c7_108 = arith.constant 7 : index
    %192 = memref.load %arg2[%c2_107, %c7_108] : memref<6x13xf32, #tpu.memory_space<smem>>
    %193 = vector.broadcast %192 : f32 to vector<8x1xf32>
    %194 = arith.mulf %15, %193 : vector<8x1xf32>
    %195 = arith.addf %191, %194 : vector<8x1xf32>
    %c2_109 = arith.constant 2 : index
    %c8_110 = arith.constant 8 : index
    %196 = memref.load %arg2[%c2_109, %c8_110] : memref<6x13xf32, #tpu.memory_space<smem>>
    %197 = vector.broadcast %196 : f32 to vector<8x1xf32>
    %198 = arith.mulf %17, %197 : vector<8x1xf32>
    %199 = arith.addf %195, %198 : vector<8x1xf32>
    %c2_111 = arith.constant 2 : index
    %c9_112 = arith.constant 9 : index
    %200 = memref.load %arg2[%c2_111, %c9_112] : memref<6x13xf32, #tpu.memory_space<smem>>
    %201 = vector.broadcast %200 : f32 to vector<8x1xf32>
    %202 = arith.mulf %19, %201 : vector<8x1xf32>
    %203 = arith.addf %199, %202 : vector<8x1xf32>
    %c2_113 = arith.constant 2 : index
    %c10_114 = arith.constant 10 : index
    %204 = memref.load %arg2[%c2_113, %c10_114] : memref<6x13xf32, #tpu.memory_space<smem>>
    %205 = vector.broadcast %204 : f32 to vector<8x1xf32>
    %206 = arith.mulf %21, %205 : vector<8x1xf32>
    %207 = arith.addf %203, %206 : vector<8x1xf32>
    %c2_115 = arith.constant 2 : index
    %c11_116 = arith.constant 11 : index
    %208 = memref.load %arg2[%c2_115, %c11_116] : memref<6x13xf32, #tpu.memory_space<smem>>
    %209 = vector.broadcast %208 : f32 to vector<8x1xf32>
    %210 = arith.mulf %23, %209 : vector<8x1xf32>
    %211 = arith.addf %207, %210 : vector<8x1xf32>
    %c2_117 = arith.constant 2 : index
    %c12_118 = arith.constant 12 : index
    %212 = memref.load %arg2[%c2_117, %c12_118] : memref<6x13xf32, #tpu.memory_space<smem>>
    %213 = vector.broadcast %212 : f32 to vector<8x1xf32>
    %214 = arith.mulf %25, %213 : vector<8x1xf32>
    %215 = arith.addf %211, %214 : vector<8x1xf32>
    %c2_119 = arith.constant 2 : index
    %216 = memref.load %arg3[%c2_119] : memref<6xf32, #tpu.memory_space<smem>>
    %217 = vector.broadcast %216 : f32 to vector<8x1xf32>
    %218 = arith.addf %215, %217 : vector<8x1xf32>
    %219 = arith.negf %218 : vector<8x1xf32>
    %220 = math.exp %219 : vector<8x1xf32>
    %cst_120 = arith.constant 1.000000e+00 : f32
    %221 = vector.broadcast %cst_120 : f32 to vector<8x1xf32>
    %222 = arith.addf %221, %220 : vector<8x1xf32>
    %223 = arith.divf %221, %222 : vector<8x1xf32>
    %c0_121 = arith.constant 0 : index
    %c2_122 = arith.constant 2 : index
    %224 = memref.load %arg4[%c0_121, %c2_122] : memref<3x6xf32, #tpu.memory_space<smem>>
    %225 = vector.broadcast %224 : f32 to vector<8x1xf32>
    %226 = arith.mulf %223, %225 : vector<8x1xf32>
    %227 = arith.addf %156, %226 : vector<8x1xf32>
    %c1_123 = arith.constant 1 : index
    %c2_124 = arith.constant 2 : index
    %228 = memref.load %arg4[%c1_123, %c2_124] : memref<3x6xf32, #tpu.memory_space<smem>>
    %229 = vector.broadcast %228 : f32 to vector<8x1xf32>
    %230 = arith.mulf %223, %229 : vector<8x1xf32>
    %231 = arith.addf %160, %230 : vector<8x1xf32>
    %c2_125 = arith.constant 2 : index
    %c2_126 = arith.constant 2 : index
    %232 = memref.load %arg4[%c2_125, %c2_126] : memref<3x6xf32, #tpu.memory_space<smem>>
    %233 = vector.broadcast %232 : f32 to vector<8x1xf32>
    %234 = arith.mulf %223, %233 : vector<8x1xf32>
    %235 = arith.addf %164, %234 : vector<8x1xf32>
    %c3_127 = arith.constant 3 : index
    %c0_128 = arith.constant 0 : index
    %236 = memref.load %arg2[%c3_127, %c0_128] : memref<6x13xf32, #tpu.memory_space<smem>>
    %237 = vector.broadcast %236 : f32 to vector<8x1xf32>
    %238 = arith.mulf %1, %237 : vector<8x1xf32>
    %c3_129 = arith.constant 3 : index
    %c1_130 = arith.constant 1 : index
    %239 = memref.load %arg2[%c3_129, %c1_130] : memref<6x13xf32, #tpu.memory_space<smem>>
    %240 = vector.broadcast %239 : f32 to vector<8x1xf32>
    %241 = arith.mulf %3, %240 : vector<8x1xf32>
    %242 = arith.addf %238, %241 : vector<8x1xf32>
    %c3_131 = arith.constant 3 : index
    %c2_132 = arith.constant 2 : index
    %243 = memref.load %arg2[%c3_131, %c2_132] : memref<6x13xf32, #tpu.memory_space<smem>>
    %244 = vector.broadcast %243 : f32 to vector<8x1xf32>
    %245 = arith.mulf %5, %244 : vector<8x1xf32>
    %246 = arith.addf %242, %245 : vector<8x1xf32>
    %c3_133 = arith.constant 3 : index
    %c3_134 = arith.constant 3 : index
    %247 = memref.load %arg2[%c3_133, %c3_134] : memref<6x13xf32, #tpu.memory_space<smem>>
    %248 = vector.broadcast %247 : f32 to vector<8x1xf32>
    %249 = arith.mulf %7, %248 : vector<8x1xf32>
    %250 = arith.addf %246, %249 : vector<8x1xf32>
    %c3_135 = arith.constant 3 : index
    %c4_136 = arith.constant 4 : index
    %251 = memref.load %arg2[%c3_135, %c4_136] : memref<6x13xf32, #tpu.memory_space<smem>>
    %252 = vector.broadcast %251 : f32 to vector<8x1xf32>
    %253 = arith.mulf %9, %252 : vector<8x1xf32>
    %254 = arith.addf %250, %253 : vector<8x1xf32>
    %c3_137 = arith.constant 3 : index
    %c5_138 = arith.constant 5 : index
    %255 = memref.load %arg2[%c3_137, %c5_138] : memref<6x13xf32, #tpu.memory_space<smem>>
    %256 = vector.broadcast %255 : f32 to vector<8x1xf32>
    %257 = arith.mulf %11, %256 : vector<8x1xf32>
    %258 = arith.addf %254, %257 : vector<8x1xf32>
    %c3_139 = arith.constant 3 : index
    %c6_140 = arith.constant 6 : index
    %259 = memref.load %arg2[%c3_139, %c6_140] : memref<6x13xf32, #tpu.memory_space<smem>>
    %260 = vector.broadcast %259 : f32 to vector<8x1xf32>
    %261 = arith.mulf %13, %260 : vector<8x1xf32>
    %262 = arith.addf %258, %261 : vector<8x1xf32>
    %c3_141 = arith.constant 3 : index
    %c7_142 = arith.constant 7 : index
    %263 = memref.load %arg2[%c3_141, %c7_142] : memref<6x13xf32, #tpu.memory_space<smem>>
    %264 = vector.broadcast %263 : f32 to vector<8x1xf32>
    %265 = arith.mulf %15, %264 : vector<8x1xf32>
    %266 = arith.addf %262, %265 : vector<8x1xf32>
    %c3_143 = arith.constant 3 : index
    %c8_144 = arith.constant 8 : index
    %267 = memref.load %arg2[%c3_143, %c8_144] : memref<6x13xf32, #tpu.memory_space<smem>>
    %268 = vector.broadcast %267 : f32 to vector<8x1xf32>
    %269 = arith.mulf %17, %268 : vector<8x1xf32>
    %270 = arith.addf %266, %269 : vector<8x1xf32>
    %c3_145 = arith.constant 3 : index
    %c9_146 = arith.constant 9 : index
    %271 = memref.load %arg2[%c3_145, %c9_146] : memref<6x13xf32, #tpu.memory_space<smem>>
    %272 = vector.broadcast %271 : f32 to vector<8x1xf32>
    %273 = arith.mulf %19, %272 : vector<8x1xf32>
    %274 = arith.addf %270, %273 : vector<8x1xf32>
    %c3_147 = arith.constant 3 : index
    %c10_148 = arith.constant 10 : index
    %275 = memref.load %arg2[%c3_147, %c10_148] : memref<6x13xf32, #tpu.memory_space<smem>>
    %276 = vector.broadcast %275 : f32 to vector<8x1xf32>
    %277 = arith.mulf %21, %276 : vector<8x1xf32>
    %278 = arith.addf %274, %277 : vector<8x1xf32>
    %c3_149 = arith.constant 3 : index
    %c11_150 = arith.constant 11 : index
    %279 = memref.load %arg2[%c3_149, %c11_150] : memref<6x13xf32, #tpu.memory_space<smem>>
    %280 = vector.broadcast %279 : f32 to vector<8x1xf32>
    %281 = arith.mulf %23, %280 : vector<8x1xf32>
    %282 = arith.addf %278, %281 : vector<8x1xf32>
    %c3_151 = arith.constant 3 : index
    %c12_152 = arith.constant 12 : index
    %283 = memref.load %arg2[%c3_151, %c12_152] : memref<6x13xf32, #tpu.memory_space<smem>>
    %284 = vector.broadcast %283 : f32 to vector<8x1xf32>
    %285 = arith.mulf %25, %284 : vector<8x1xf32>
    %286 = arith.addf %282, %285 : vector<8x1xf32>
    %c3_153 = arith.constant 3 : index
    %287 = memref.load %arg3[%c3_153] : memref<6xf32, #tpu.memory_space<smem>>
    %288 = vector.broadcast %287 : f32 to vector<8x1xf32>
    %289 = arith.addf %286, %288 : vector<8x1xf32>
    %290 = arith.negf %289 : vector<8x1xf32>
    %291 = math.exp %290 : vector<8x1xf32>
    %cst_154 = arith.constant 1.000000e+00 : f32
    %292 = vector.broadcast %cst_154 : f32 to vector<8x1xf32>
    %293 = arith.addf %292, %291 : vector<8x1xf32>
    %294 = arith.divf %292, %293 : vector<8x1xf32>
    %c0_155 = arith.constant 0 : index
    %c3_156 = arith.constant 3 : index
    %295 = memref.load %arg4[%c0_155, %c3_156] : memref<3x6xf32, #tpu.memory_space<smem>>
    %296 = vector.broadcast %295 : f32 to vector<8x1xf32>
    %297 = arith.mulf %294, %296 : vector<8x1xf32>
    %298 = arith.addf %227, %297 : vector<8x1xf32>
    %c1_157 = arith.constant 1 : index
    %c3_158 = arith.constant 3 : index
    %299 = memref.load %arg4[%c1_157, %c3_158] : memref<3x6xf32, #tpu.memory_space<smem>>
    %300 = vector.broadcast %299 : f32 to vector<8x1xf32>
    %301 = arith.mulf %294, %300 : vector<8x1xf32>
    %302 = arith.addf %231, %301 : vector<8x1xf32>
    %c2_159 = arith.constant 2 : index
    %c3_160 = arith.constant 3 : index
    %303 = memref.load %arg4[%c2_159, %c3_160] : memref<3x6xf32, #tpu.memory_space<smem>>
    %304 = vector.broadcast %303 : f32 to vector<8x1xf32>
    %305 = arith.mulf %294, %304 : vector<8x1xf32>
    %306 = arith.addf %235, %305 : vector<8x1xf32>
    %c4_161 = arith.constant 4 : index
    %c0_162 = arith.constant 0 : index
    %307 = memref.load %arg2[%c4_161, %c0_162] : memref<6x13xf32, #tpu.memory_space<smem>>
    %308 = vector.broadcast %307 : f32 to vector<8x1xf32>
    %309 = arith.mulf %1, %308 : vector<8x1xf32>
    %c4_163 = arith.constant 4 : index
    %c1_164 = arith.constant 1 : index
    %310 = memref.load %arg2[%c4_163, %c1_164] : memref<6x13xf32, #tpu.memory_space<smem>>
    %311 = vector.broadcast %310 : f32 to vector<8x1xf32>
    %312 = arith.mulf %3, %311 : vector<8x1xf32>
    %313 = arith.addf %309, %312 : vector<8x1xf32>
    %c4_165 = arith.constant 4 : index
    %c2_166 = arith.constant 2 : index
    %314 = memref.load %arg2[%c4_165, %c2_166] : memref<6x13xf32, #tpu.memory_space<smem>>
    %315 = vector.broadcast %314 : f32 to vector<8x1xf32>
    %316 = arith.mulf %5, %315 : vector<8x1xf32>
    %317 = arith.addf %313, %316 : vector<8x1xf32>
    %c4_167 = arith.constant 4 : index
    %c3_168 = arith.constant 3 : index
    %318 = memref.load %arg2[%c4_167, %c3_168] : memref<6x13xf32, #tpu.memory_space<smem>>
    %319 = vector.broadcast %318 : f32 to vector<8x1xf32>
    %320 = arith.mulf %7, %319 : vector<8x1xf32>
    %321 = arith.addf %317, %320 : vector<8x1xf32>
    %c4_169 = arith.constant 4 : index
    %c4_170 = arith.constant 4 : index
    %322 = memref.load %arg2[%c4_169, %c4_170] : memref<6x13xf32, #tpu.memory_space<smem>>
    %323 = vector.broadcast %322 : f32 to vector<8x1xf32>
    %324 = arith.mulf %9, %323 : vector<8x1xf32>
    %325 = arith.addf %321, %324 : vector<8x1xf32>
    %c4_171 = arith.constant 4 : index
    %c5_172 = arith.constant 5 : index
    %326 = memref.load %arg2[%c4_171, %c5_172] : memref<6x13xf32, #tpu.memory_space<smem>>
    %327 = vector.broadcast %326 : f32 to vector<8x1xf32>
    %328 = arith.mulf %11, %327 : vector<8x1xf32>
    %329 = arith.addf %325, %328 : vector<8x1xf32>
    %c4_173 = arith.constant 4 : index
    %c6_174 = arith.constant 6 : index
    %330 = memref.load %arg2[%c4_173, %c6_174] : memref<6x13xf32, #tpu.memory_space<smem>>
    %331 = vector.broadcast %330 : f32 to vector<8x1xf32>
    %332 = arith.mulf %13, %331 : vector<8x1xf32>
    %333 = arith.addf %329, %332 : vector<8x1xf32>
    %c4_175 = arith.constant 4 : index
    %c7_176 = arith.constant 7 : index
    %334 = memref.load %arg2[%c4_175, %c7_176] : memref<6x13xf32, #tpu.memory_space<smem>>
    %335 = vector.broadcast %334 : f32 to vector<8x1xf32>
    %336 = arith.mulf %15, %335 : vector<8x1xf32>
    %337 = arith.addf %333, %336 : vector<8x1xf32>
    %c4_177 = arith.constant 4 : index
    %c8_178 = arith.constant 8 : index
    %338 = memref.load %arg2[%c4_177, %c8_178] : memref<6x13xf32, #tpu.memory_space<smem>>
    %339 = vector.broadcast %338 : f32 to vector<8x1xf32>
    %340 = arith.mulf %17, %339 : vector<8x1xf32>
    %341 = arith.addf %337, %340 : vector<8x1xf32>
    %c4_179 = arith.constant 4 : index
    %c9_180 = arith.constant 9 : index
    %342 = memref.load %arg2[%c4_179, %c9_180] : memref<6x13xf32, #tpu.memory_space<smem>>
    %343 = vector.broadcast %342 : f32 to vector<8x1xf32>
    %344 = arith.mulf %19, %343 : vector<8x1xf32>
    %345 = arith.addf %341, %344 : vector<8x1xf32>
    %c4_181 = arith.constant 4 : index
    %c10_182 = arith.constant 10 : index
    %346 = memref.load %arg2[%c4_181, %c10_182] : memref<6x13xf32, #tpu.memory_space<smem>>
    %347 = vector.broadcast %346 : f32 to vector<8x1xf32>
    %348 = arith.mulf %21, %347 : vector<8x1xf32>
    %349 = arith.addf %345, %348 : vector<8x1xf32>
    %c4_183 = arith.constant 4 : index
    %c11_184 = arith.constant 11 : index
    %350 = memref.load %arg2[%c4_183, %c11_184] : memref<6x13xf32, #tpu.memory_space<smem>>
    %351 = vector.broadcast %350 : f32 to vector<8x1xf32>
    %352 = arith.mulf %23, %351 : vector<8x1xf32>
    %353 = arith.addf %349, %352 : vector<8x1xf32>
    %c4_185 = arith.constant 4 : index
    %c12_186 = arith.constant 12 : index
    %354 = memref.load %arg2[%c4_185, %c12_186] : memref<6x13xf32, #tpu.memory_space<smem>>
    %355 = vector.broadcast %354 : f32 to vector<8x1xf32>
    %356 = arith.mulf %25, %355 : vector<8x1xf32>
    %357 = arith.addf %353, %356 : vector<8x1xf32>
    %c4_187 = arith.constant 4 : index
    %358 = memref.load %arg3[%c4_187] : memref<6xf32, #tpu.memory_space<smem>>
    %359 = vector.broadcast %358 : f32 to vector<8x1xf32>
    %360 = arith.addf %357, %359 : vector<8x1xf32>
    %361 = arith.negf %360 : vector<8x1xf32>
    %362 = math.exp %361 : vector<8x1xf32>
    %cst_188 = arith.constant 1.000000e+00 : f32
    %363 = vector.broadcast %cst_188 : f32 to vector<8x1xf32>
    %364 = arith.addf %363, %362 : vector<8x1xf32>
    %365 = arith.divf %363, %364 : vector<8x1xf32>
    %c0_189 = arith.constant 0 : index
    %c4_190 = arith.constant 4 : index
    %366 = memref.load %arg4[%c0_189, %c4_190] : memref<3x6xf32, #tpu.memory_space<smem>>
    %367 = vector.broadcast %366 : f32 to vector<8x1xf32>
    %368 = arith.mulf %365, %367 : vector<8x1xf32>
    %369 = arith.addf %298, %368 : vector<8x1xf32>
    %c1_191 = arith.constant 1 : index
    %c4_192 = arith.constant 4 : index
    %370 = memref.load %arg4[%c1_191, %c4_192] : memref<3x6xf32, #tpu.memory_space<smem>>
    %371 = vector.broadcast %370 : f32 to vector<8x1xf32>
    %372 = arith.mulf %365, %371 : vector<8x1xf32>
    %373 = arith.addf %302, %372 : vector<8x1xf32>
    %c2_193 = arith.constant 2 : index
    %c4_194 = arith.constant 4 : index
    %374 = memref.load %arg4[%c2_193, %c4_194] : memref<3x6xf32, #tpu.memory_space<smem>>
    %375 = vector.broadcast %374 : f32 to vector<8x1xf32>
    %376 = arith.mulf %365, %375 : vector<8x1xf32>
    %377 = arith.addf %306, %376 : vector<8x1xf32>
    %c5_195 = arith.constant 5 : index
    %c0_196 = arith.constant 0 : index
    %378 = memref.load %arg2[%c5_195, %c0_196] : memref<6x13xf32, #tpu.memory_space<smem>>
    %379 = vector.broadcast %378 : f32 to vector<8x1xf32>
    %380 = arith.mulf %1, %379 : vector<8x1xf32>
    %c5_197 = arith.constant 5 : index
    %c1_198 = arith.constant 1 : index
    %381 = memref.load %arg2[%c5_197, %c1_198] : memref<6x13xf32, #tpu.memory_space<smem>>
    %382 = vector.broadcast %381 : f32 to vector<8x1xf32>
    %383 = arith.mulf %3, %382 : vector<8x1xf32>
    %384 = arith.addf %380, %383 : vector<8x1xf32>
    %c5_199 = arith.constant 5 : index
    %c2_200 = arith.constant 2 : index
    %385 = memref.load %arg2[%c5_199, %c2_200] : memref<6x13xf32, #tpu.memory_space<smem>>
    %386 = vector.broadcast %385 : f32 to vector<8x1xf32>
    %387 = arith.mulf %5, %386 : vector<8x1xf32>
    %388 = arith.addf %384, %387 : vector<8x1xf32>
    %c5_201 = arith.constant 5 : index
    %c3_202 = arith.constant 3 : index
    %389 = memref.load %arg2[%c5_201, %c3_202] : memref<6x13xf32, #tpu.memory_space<smem>>
    %390 = vector.broadcast %389 : f32 to vector<8x1xf32>
    %391 = arith.mulf %7, %390 : vector<8x1xf32>
    %392 = arith.addf %388, %391 : vector<8x1xf32>
    %c5_203 = arith.constant 5 : index
    %c4_204 = arith.constant 4 : index
    %393 = memref.load %arg2[%c5_203, %c4_204] : memref<6x13xf32, #tpu.memory_space<smem>>
    %394 = vector.broadcast %393 : f32 to vector<8x1xf32>
    %395 = arith.mulf %9, %394 : vector<8x1xf32>
    %396 = arith.addf %392, %395 : vector<8x1xf32>
    %c5_205 = arith.constant 5 : index
    %c5_206 = arith.constant 5 : index
    %397 = memref.load %arg2[%c5_205, %c5_206] : memref<6x13xf32, #tpu.memory_space<smem>>
    %398 = vector.broadcast %397 : f32 to vector<8x1xf32>
    %399 = arith.mulf %11, %398 : vector<8x1xf32>
    %400 = arith.addf %396, %399 : vector<8x1xf32>
    %c5_207 = arith.constant 5 : index
    %c6_208 = arith.constant 6 : index
    %401 = memref.load %arg2[%c5_207, %c6_208] : memref<6x13xf32, #tpu.memory_space<smem>>
    %402 = vector.broadcast %401 : f32 to vector<8x1xf32>
    %403 = arith.mulf %13, %402 : vector<8x1xf32>
    %404 = arith.addf %400, %403 : vector<8x1xf32>
    %c5_209 = arith.constant 5 : index
    %c7_210 = arith.constant 7 : index
    %405 = memref.load %arg2[%c5_209, %c7_210] : memref<6x13xf32, #tpu.memory_space<smem>>
    %406 = vector.broadcast %405 : f32 to vector<8x1xf32>
    %407 = arith.mulf %15, %406 : vector<8x1xf32>
    %408 = arith.addf %404, %407 : vector<8x1xf32>
    %c5_211 = arith.constant 5 : index
    %c8_212 = arith.constant 8 : index
    %409 = memref.load %arg2[%c5_211, %c8_212] : memref<6x13xf32, #tpu.memory_space<smem>>
    %410 = vector.broadcast %409 : f32 to vector<8x1xf32>
    %411 = arith.mulf %17, %410 : vector<8x1xf32>
    %412 = arith.addf %408, %411 : vector<8x1xf32>
    %c5_213 = arith.constant 5 : index
    %c9_214 = arith.constant 9 : index
    %413 = memref.load %arg2[%c5_213, %c9_214] : memref<6x13xf32, #tpu.memory_space<smem>>
    %414 = vector.broadcast %413 : f32 to vector<8x1xf32>
    %415 = arith.mulf %19, %414 : vector<8x1xf32>
    %416 = arith.addf %412, %415 : vector<8x1xf32>
    %c5_215 = arith.constant 5 : index
    %c10_216 = arith.constant 10 : index
    %417 = memref.load %arg2[%c5_215, %c10_216] : memref<6x13xf32, #tpu.memory_space<smem>>
    %418 = vector.broadcast %417 : f32 to vector<8x1xf32>
    %419 = arith.mulf %21, %418 : vector<8x1xf32>
    %420 = arith.addf %416, %419 : vector<8x1xf32>
    %c5_217 = arith.constant 5 : index
    %c11_218 = arith.constant 11 : index
    %421 = memref.load %arg2[%c5_217, %c11_218] : memref<6x13xf32, #tpu.memory_space<smem>>
    %422 = vector.broadcast %421 : f32 to vector<8x1xf32>
    %423 = arith.mulf %23, %422 : vector<8x1xf32>
    %424 = arith.addf %420, %423 : vector<8x1xf32>
    %c5_219 = arith.constant 5 : index
    %c12_220 = arith.constant 12 : index
    %425 = memref.load %arg2[%c5_219, %c12_220] : memref<6x13xf32, #tpu.memory_space<smem>>
    %426 = vector.broadcast %425 : f32 to vector<8x1xf32>
    %427 = arith.mulf %25, %426 : vector<8x1xf32>
    %428 = arith.addf %424, %427 : vector<8x1xf32>
    %c5_221 = arith.constant 5 : index
    %429 = memref.load %arg3[%c5_221] : memref<6xf32, #tpu.memory_space<smem>>
    %430 = vector.broadcast %429 : f32 to vector<8x1xf32>
    %431 = arith.addf %428, %430 : vector<8x1xf32>
    %432 = arith.negf %431 : vector<8x1xf32>
    %433 = math.exp %432 : vector<8x1xf32>
    %cst_222 = arith.constant 1.000000e+00 : f32
    %434 = vector.broadcast %cst_222 : f32 to vector<8x1xf32>
    %435 = arith.addf %434, %433 : vector<8x1xf32>
    %436 = arith.divf %434, %435 : vector<8x1xf32>
    %c0_223 = arith.constant 0 : index
    %c5_224 = arith.constant 5 : index
    %437 = memref.load %arg4[%c0_223, %c5_224] : memref<3x6xf32, #tpu.memory_space<smem>>
    %438 = vector.broadcast %437 : f32 to vector<8x1xf32>
    %439 = arith.mulf %436, %438 : vector<8x1xf32>
    %440 = arith.addf %369, %439 : vector<8x1xf32>
    %c1_225 = arith.constant 1 : index
    %c5_226 = arith.constant 5 : index
    %441 = memref.load %arg4[%c1_225, %c5_226] : memref<3x6xf32, #tpu.memory_space<smem>>
    %442 = vector.broadcast %441 : f32 to vector<8x1xf32>
    %443 = arith.mulf %436, %442 : vector<8x1xf32>
    %444 = arith.addf %373, %443 : vector<8x1xf32>
    %c2_227 = arith.constant 2 : index
    %c5_228 = arith.constant 5 : index
    %445 = memref.load %arg4[%c2_227, %c5_228] : memref<3x6xf32, #tpu.memory_space<smem>>
    %446 = vector.broadcast %445 : f32 to vector<8x1xf32>
    %447 = arith.mulf %436, %446 : vector<8x1xf32>
    %448 = arith.addf %377, %447 : vector<8x1xf32>
    %c0_229 = arith.constant 0 : index
    %449 = memref.load %arg5[%c0_229] : memref<3xf32, #tpu.memory_space<smem>>
    %450 = vector.broadcast %449 : f32 to vector<8x1xf32>
    %451 = arith.addf %440, %450 : vector<8x1xf32>
    %c1_230 = arith.constant 1 : index
    %452 = memref.load %arg5[%c1_230] : memref<3xf32, #tpu.memory_space<smem>>
    %453 = vector.broadcast %452 : f32 to vector<8x1xf32>
    %454 = arith.addf %444, %453 : vector<8x1xf32>
    %c2_231 = arith.constant 2 : index
    %455 = memref.load %arg5[%c2_231] : memref<3xf32, #tpu.memory_space<smem>>
    %456 = vector.broadcast %455 : f32 to vector<8x1xf32>
    %457 = arith.addf %448, %456 : vector<8x1xf32>
    %458 = arith.maximumf %451, %454 : vector<8x1xf32>
    %459 = arith.maximumf %458, %457 : vector<8x1xf32>
    %460 = arith.subf %451, %459 : vector<8x1xf32>
    %461 = math.exp %460 : vector<8x1xf32>
    %462 = arith.subf %454, %459 : vector<8x1xf32>
    %463 = math.exp %462 : vector<8x1xf32>
    %464 = arith.subf %457, %459 : vector<8x1xf32>
    %465 = math.exp %464 : vector<8x1xf32>
    %466 = arith.addf %461, %463 : vector<8x1xf32>
    %467 = arith.addf %466, %465 : vector<8x1xf32>
    %468 = tpu.reciprocal %467 {approx = true} : vector<8x1xf32> -> vector<8x1xf32>
    %469 = arith.mulf %467, %468 : vector<8x1xf32>
    %cst_232 = arith.constant 2.000000e+00 : f32
    %470 = vector.broadcast %cst_232 : f32 to vector<8x1xf32>
    %471 = arith.subf %470, %469 : vector<8x1xf32>
    %472 = arith.mulf %468, %471 : vector<8x1xf32>
    %473 = arith.mulf %461, %472 : vector<8x1xf32>
    %c0_233 = arith.constant 0 : index
    %c0_234 = arith.constant 0 : index
    %c0_235 = arith.constant 0 : index
    %474 = vector.load %arg6[%c0_233, %c0_234, %c0_235] : memref<3x8x1xf32, #tpu.memory_space<vmem>>, vector<1x8x1xf32>
    %475 = vector.shape_cast %474 : vector<1x8x1xf32> to vector<8x1xf32>
    %476 = vector.shape_cast %473 : vector<8x1xf32> to vector<1x8x1xf32>
    tpu.vector_store %arg6[%c0_233, %c0_234, %c0_235], %476 {strides = array<i32>} : memref<3x8x1xf32, #tpu.memory_space<vmem>>, vector<1x8x1xf32>,
    %477 = arith.mulf %463, %472 : vector<8x1xf32>
    %c1_236 = arith.constant 1 : index
    %c0_237 = arith.constant 0 : index
    %c0_238 = arith.constant 0 : index
    %478 = vector.load %arg6[%c1_236, %c0_237, %c0_238] : memref<3x8x1xf32, #tpu.memory_space<vmem>>, vector<1x8x1xf32>
    %479 = vector.shape_cast %478 : vector<1x8x1xf32> to vector<8x1xf32>
    %480 = vector.shape_cast %477 : vector<8x1xf32> to vector<1x8x1xf32>
    tpu.vector_store %arg6[%c1_236, %c0_237, %c0_238], %480 {strides = array<i32>} : memref<3x8x1xf32, #tpu.memory_space<vmem>>, vector<1x8x1xf32>,
    %481 = arith.mulf %465, %472 : vector<8x1xf32>
    %c2_239 = arith.constant 2 : index
    %c0_240 = arith.constant 0 : index
    %c0_241 = arith.constant 0 : index
    %482 = vector.load %arg6[%c2_239, %c0_240, %c0_241] : memref<3x8x1xf32, #tpu.memory_space<vmem>>, vector<1x8x1xf32>
    %483 = vector.shape_cast %482 : vector<1x8x1xf32> to vector<8x1xf32>
    %484 = vector.shape_cast %481 : vector<8x1xf32> to vector<1x8x1xf32>
    tpu.vector_store %arg6[%c2_239, %c0_240, %c0_241], %484 {strides = array<i32>} : memref<3x8x1xf32, #tpu.memory_space<vmem>>, vector<1x8x1xf32>,
    return
  }
  func.func @transform_0(%arg0: i32) -> (i32, i32, i32) {
    %c0_i32 = arith.constant 0 : i32
    %c0_i32_0 = arith.constant 0 : i32
    %c0_i32_1 = arith.constant 0 : i32
    return %c0_i32, %c0_i32_0, %arg0 : i32, i32, i32
  }
  func.func @transform_1(%arg0: i32) -> (i32, i32) {
    %c0_i32 = arith.constant 0 : i32
    %c0_i32_0 = arith.constant 0 : i32
    %c0_i32_1 = arith.constant 0 : i32
    return %c0_i32, %c0_i32_0 : i32, i32
  }
  func.func @transform_2(%arg0: i32) -> i32 {
    %c0_i32 = arith.constant 0 : i32
    %c0_i32_0 = arith.constant 0 : i32
    return %c0_i32 : i32
  }
  func.func @transform_3(%arg0: i32) -> (i32, i32) {
    %c0_i32 = arith.constant 0 : i32
    %c0_i32_0 = arith.constant 0 : i32
    %c0_i32_1 = arith.constant 0 : i32
    return %c0_i32, %c0_i32_0 : i32, i32
  }
  func.func @transform_4(%arg0: i32) -> i32 {
    %c0_i32 = arith.constant 0 : i32
    %c0_i32_0 = arith.constant 0 : i32
    return %c0_i32 : i32
  }
  func.func @transform_5(%arg0: i32) -> (i32, i32, i32) {
    %c0_i32 = arith.constant 0 : i32
    %c0_i32_0 = arith.constant 0 : i32
    %c0_i32_1 = arith.constant 0 : i32
    return %c0_i32, %c0_i32_0, %arg0 : i32, i32, i32
  }
}

</mosaic_0001>

<bundles_post_ra>
// kernel: linear_model_forward.1
= control target key start
LH: loop header
LB: loop body
LE: loop exit
PB: predicated region body
PF: predicated region fallthrough
CT: control target
= control target key end

     0   :  { %10 = vsyncpa [#allocation3], 0  ;;  %s1225_s0 = inlined_call_operand.vmem [shape: f32[13,8,1], index: 0, kind: input, shape index: {}]   ;;  %s1226_s1 = inlined_call_operand.vmem [shape: f32[6,13], index: 1, kind: input, shape index: {}]   ;;  %s1227_s2 = inlined_call_operand.vmem [shape: f32[6], index: 2, kind: input, shape index: {}]   ;;  %s1228_s3 = inlined_call_operand.vmem [shape: f32[3,6], index: 3, kind: input, shape index: {}]   ;;  %s1229_s4 = inlined_call_operand.vmem [shape: f32[3], index: 4, kind: input, shape index: {}]   ;;  %s1230_s5 = inlined_call_operand.vmem [shape: f32[3,8,1], index: 5, kind: output, shape index: {}]  }
   0x1   :  { %11 = vsyncpa [#allocation5], 0  ;;  %s31_s20 = sshll.u32 %s1227_s2, 4  ;;  %s32_s20 = int_to_ptr.vmem [resolvable:$true] %s31_s20 }
   0x2   :  { %12 = vsyncpa [#allocation8], 0  ;;  %s21_s23 = sshll.u32 %s1226_s1, 4  ;;  %s721_s24 = scalar_lea.vmem %s32_s20, 16  ;;  %s22_s23 = int_to_ptr.vmem [resolvable:$true] %s21_s23 }
   0x3   :  { %p722_p0 = scmp.ne.s32.totalorder %s32_s20, %s721_s24  ;;  %p726_p1 = scmp.lt.s32.totalorder %s32_s20, %s32_s20 }
   0x4   :  { %p727_p2 = scmp.lt.s32.totalorder %s721_s24, %s721_s24 }
   0x6   :  { %p728_p3 = por %p727_p2, %p726_p1 }
   0x8   :  { %p729_p4 = pnand %p728_p3, %p722_p0 }
   0xa   :  { %732 = shalt.err (!%p729_p4)
}
   0xb   :  { %s775_s25 = smov [#allocation4]   ;;  %s733_s26 = scalar_lea.vmem %s22_s23, 128 }
   0xc   :  { %34 = dma.vmem_to_smem %s32_s20, 16, %s775_s25, [#allocation5]  }
   0xd   :  { %p734_p5 = scmp.ne.s32.totalorder %s22_s23, %s733_s26  ;;  %p738_p6 = scmp.lt.s32.totalorder %s22_s23, %s22_s23 }
   0xe   :  { %p739_p7 = scmp.lt.s32.totalorder %s733_s26, %s733_s26 }
  0x10   :  { %p740_p8 = por %p739_p7, %p738_p6 }
  0x12   :  { %p741_p9 = pnand %p740_p8, %p734_p5 }
  0x14   :  { %744 = shalt.err (!%p741_p9)
}
  0x15   :  { %s776_s2 = smov [#allocation2]   ;;  %s41_s28 = sshll.u32 %s1228_s3, 4  ;;  %s42_s28 = int_to_ptr.vmem [resolvable:$true] %s41_s28 }
  0x16   :  { %24 = dma.vmem_to_smem %s22_s23, 128, %s776_s2, [#allocation3]  }
  0x17   :  { %s51_s6 = sshll.u32 %s1229_s4, 4  ;;  %s745_s7 = scalar_lea.vmem %s42_s28, 64  ;;  %s52_s6 = int_to_ptr.vmem [resolvable:$true] %s51_s6 }
  0x18   :  { %p746_p10 = scmp.ne.s32.totalorder %s42_s28, %s745_s7  ;;  %p750_p11 = scmp.lt.s32.totalorder %s42_s28, %s42_s28 }
  0x19   :  { %p751_p12 = scmp.lt.s32.totalorder %s745_s7, %s745_s7 }
  0x1b   :  { %p752_p13 = por %p751_p12, %p750_p11 }
  0x1d   :  { %p753_p0 = pnand %p752_p13, %p746_p10 }
  0x1f   :  { %756 = shalt.err (!%p753_p0)
}
  0x20   :  { %s777_s8 = smov [#allocation6]   ;;  %s757_s9 = scalar_lea.vmem %s52_s6, 16 }
  0x21   :  { %44 = dma.vmem_to_smem %s42_s28, 64, %s777_s8, [#allocation5]  }
  0x22   :  { %p758_p1 = scmp.ne.s32.totalorder %s52_s6, %s757_s9  ;;  %p762_p2 = scmp.lt.s32.totalorder %s52_s6, %s52_s6 }
  0x23   :  { %p763_p3 = scmp.lt.s32.totalorder %s757_s9, %s757_s9 }
  0x25   :  { %p764_p4 = por %p763_p3, %p762_p2 }
  0x27   :  { %p765_p5 = pnand %p764_p4, %p758_p1 }
  0x29   :  { %768 = shalt.err (!%p765_p5)
}
  0x2a   :  { %s778_s3 = smov [#allocation7]  }
  0x2b   :  { %54 = dma.vmem_to_smem %s52_s6, 16, %s778_s3, [#allocation8]  }
  0x2c   :  { %769 = dma.done.wait [#allocation3], 128  }
  0x2d   :  { %770 = vsyncadd [#allocation3], 4294967168 }
  0x2e   :  { %771 = dma.done.wait [#allocation5], 80  }
  0x2f   :  { %772 = vsyncadd [#allocation5], 4294967216 }
  0x30   :  { %773 = dma.done.wait [#allocation8], 16  }
  0x31   :  { %774 = vsyncadd [#allocation8], 4294967280 }
  0x32   :  { %67 = sfence }
  0x33   :  { %s93_s4 = sld [smem:[#allocation2]]  ;;  %s576_s10 = sld [smem:[#allocation2 + $0x1]]  ;;  %v824_v0 = vld [vmem:[%s1225_s0] sm:$0xff]  ;;  %v831_v1 = vld [vmem:[%s1225_s0 + $0x8] sm:$0xff]  ;;  %v840_v2 = vld [vmem:[%s1225_s0 + $0x10] sm:$0xff]  ;;  %vm549_vm0 = vcmask 7168  }
  0x34   :  { %s577_s11 = sld [smem:[#allocation2 + $0x2]]  ;;  %s578_s12 = sld [smem:[#allocation2 + $0x3]]  ;;  %v845_v4 = vld [vmem:[%s1225_s0 + $0x18] sm:$0xff]  ;;  %v852_v9 = vld [vmem:[%s1225_s0 + $0x20] sm:$0xff]  ;;  %v861_v15 = vld [vmem:[%s1225_s0 + $0x28] sm:$0xff] }
  0x35   :  { %s579_s15 = sld [smem:[#allocation2 + $0x4]]  ;;  %s826_s16 = sld [smem:[#allocation2 + $0x5]]  ;;  %v872_v19 = vld [vmem:[%s1225_s0 + $0x30] sm:$0xff]  ;;  %v877_v20 = vld [vmem:[%s1225_s0 + $0x38] sm:$0xff]  ;;  %v899_v33 = vld [vmem:[%s1225_s0 + $0x40] sm:$0xff] }
  0x36   :  { %s833_s19 = sld [smem:[#allocation2 + $0x6]]  ;;  %s835_s20 = sld [smem:[#allocation2 + $0x7]]  ;;  %v923_v44 = vld [vmem:[%s1225_s0 + $0x48] sm:$0xff]  ;;  %v945_v56 = vld [vmem:[%s1225_s0 + $0x50] sm:$0xff] }
  0x37   :  { %s855_s2 = sld [smem:[#allocation2 + $0x8]]  ;;  %s592_s29 = sld [smem:[#allocation2 + $0x81]] }
  0x38   :  { %s591_s1 = sld [smem:[#allocation2 + $0x80]]  ;;  %s593_s30 = sld [smem:[#allocation2 + $0x82]] }
  0x39   :  { %v94_v3 = vstv %s93_s4  ;;  %v97_v6 = vstv %s576_s10  ;;  %s865_s6 = sld [smem:[#allocation2 + $0x83]]  ;;  %s867_s7 = sld [smem:[#allocation2 + $0x84]] }
  0x3a   :  { %v95_v5 = vmul.f32 %v94_v3, %v824_v0  ;;  %v98_v7 = vmul.f32 %v831_v1, %v97_v6  ;;  %v101_v8 = vstv %s577_s11  ;;  %v105_v11 = vstv %s578_s12  ;;  %s881_s10 = sld [smem:[#allocation2 + $0x85]]  ;;  %s884_s11 = sld [smem:[#allocation2 + $0x9]] }
  0x3b   :  { %v102_v10 = vmul.f32 %v840_v2, %v101_v8  ;;  %v106_v13 = vmul.f32 %v845_v4, %v105_v11  ;;  %v109_v14 = vstv %s579_s15  ;;  %v113_v16 = vstv %s826_s16  ;;  %s886_s12 = sld [smem:[#allocation2 + $0x86]]  ;;  %s891_s13 = sld [smem:[#allocation2 + $0xa]] }
  0x3c   :  { %v99_v12 = vadd.f32 %v98_v7, %v95_v5  ;;  %v110_v18 = vmul.f32 %v852_v9, %v109_v14  ;;  %v117_v21 = vstv %s833_s19  ;;  %v121_v22 = vstv %s835_s20  ;;  %s894_s14 = sld [smem:[#allocation2 + $0x87]]  ;;  %s904_s17 = sld [smem:[#allocation2 + $0x88]] }
  0x3d   :  { %v114_v24 = vmul.f32 %v861_v15, %v113_v16  ;;  %v118_v26 = vmul.f32 %v872_v19, %v117_v21  ;;  %v122_v27 = vmul.f32 %v877_v20, %v121_v22  ;;  %v125_v29 = vstv %s855_s2  ;;  %s907_s18 = sld [smem:[#allocation2 + $0x100]]  ;;  %s909_s19 = sld [smem:[#allocation2 + $0x101]] }
  0x3e   :  { %v103_v17 = vadd.f32 %v102_v10, %v99_v12  ;;  %v163_v28 = vstv %s591_s1  ;;  %v166_v31 = vstv %s592_s29  ;;  %v170_v32 = vstv %s593_s30  ;;  %s912_s20 = sld [smem:[#allocation2 + $0x102]]  ;;  %s914_s21 = sld [smem:[#allocation2 + $0x103]] }
  0x3f   :  { %v164_v30 = vmul.f32 %v163_v28, %v824_v0  ;;  %v167_v35 = vmul.f32 %v831_v1, %v166_v31  ;;  %v171_v36 = vmul.f32 %v840_v2, %v170_v32  ;;  %v174_v37 = vstv %s865_s6  ;;  %s918_s22 = sld [smem:[#allocation2 + $0x104]]  ;;  %s926_s25 = sld [smem:[#allocation2 + $0xb]] }
  0x40   :  { %v107_v23 = vadd.f32 %v106_v13, %v103_v17  ;;  %v178_v38 = vstv %s867_s7  ;;  %v175_v41 = vmul.f32 %v845_v4, %v174_v37  ;;  %v126_v42 = vmul.f32 %v899_v33, %v125_v29  ;;  %s930_s26 = sld [smem:[#allocation2 + $0x105]]  ;;  %s933_s2 = sld [smem:[#allocation2 + $0x89]]  ;;  %v972_v13 = vld [vmem:[%s1225_s0 + $0x58] sm:$0xff] }
  0x41   :  { %v168_v40 = vadd.f32 %v167_v35, %v164_v30  ;;  %v182_v43 = vstv %s881_s10  ;;  %v129_v46 = vstv %s884_s11  ;;  %v179_v48 = vmul.f32 %v852_v9, %v178_v38  ;;  %s937_s1 = sld [smem:[#allocation2 + $0xc]]  ;;  %s940_s27 = sld [smem:[#allocation2 + $0x106]] }
  0x42   :  { %v111_v25 = vadd.f32 %v110_v18, %v107_v23  ;;  %v186_v49 = vstv %s886_s12  ;;  %v183_v51 = vmul.f32 %v861_v15, %v182_v43  ;;  %v130_v53 = vmul.f32 %v923_v44, %v129_v46  ;;  %s949_s30 = sld [smem:[#allocation2 + $0x8a]]  ;;  %s956_s6 = sld [smem:[#allocation2 + $0x107]] }
  0x43   :  { %v172_v47 = vadd.f32 %v171_v36, %v168_v40  ;;  %v133_v54 = vstv %s891_s13  ;;  %v190_v55 = vstv %s894_s14  ;;  %v187_v58 = vmul.f32 %v872_v19, %v186_v49  ;;  %s959_s7 = sld [smem:[#allocation2 + $0x8b]]  ;;  %s965_s8 = sld [smem:[#allocation2 + $0x108]] }
  0x44   :  { %v115_v34 = vadd.f32 %v114_v24, %v111_v25  ;;  %v194_v59 = vstv %s904_s17  ;;  %v235_v60 = vstv %s907_s18  ;;  %v238_v62 = vstv %s909_s19  ;;  %s967_s9 = sld [smem:[#allocation2 + $0x180]]  ;;  %s976_s10 = sld [smem:[#allocation2 + $0x109]] }
  0x45   :  { %v176_v50 = vadd.f32 %v175_v41, %v172_v47  ;;  %v236_v61 = vmul.f32 %v235_v60, %v824_v0  ;;  %v242_v63 = vstv %s912_s20  ;;  %v246_v3 = vstv %s914_s21  ;;  %s978_s11 = sld [smem:[#allocation2 + $0x181]]  ;;  %s982_s12 = sld [smem:[#allocation2 + $0x182]] }
  0x46   :  { %v119_v39 = vadd.f32 %v118_v26, %v115_v34  ;;  %v191_v6 = vmul.f32 %v877_v20, %v190_v55  ;;  %v239_v7 = vmul.f32 %v831_v1, %v238_v62  ;;  %v243_v8 = vmul.f32 %v840_v2, %v242_v63  ;;  %s984_s13 = sld [smem:[#allocation2 + $0x183]]  ;;  %s986_s14 = sld [smem:[#allocation4]] }
  0x47   :  { %v180_v57 = vadd.f32 %v179_v48, %v176_v50  ;;  %v134_v11 = vmul.f32 %v945_v56, %v133_v54  ;;  %v250_v12 = vstv %s918_s22  ;;  %v137_v14 = vstv %s926_s25  ;;  %s998_s17 = sld [smem:[#allocation2 + $0x10a]]  ;;  %s1000_s18 = sld [smem:[#allocation2 + $0x184]] }
  0x48   :  { %v123_v45 = vadd.f32 %v122_v27, %v119_v39  ;;  %v240_v17 = vadd.f32 %v239_v7, %v236_v61  ;;  %v247_v18 = vmul.f32 %v845_v4, %v246_v3  ;;  %v195_v21 = vmul.f32 %v899_v33, %v194_v59  ;;  %v993_v27 = vld [vmem:[%s1225_s0 + $0x60] sm:$0xff]  ;;  %s1006_s0 = sld [smem:[#allocation2 + $0x185]]  ;;  %s1010_s19 = sld [smem:[#allocation2 + $0x8c]] }
  0x49   :  { %v184_v5 = vadd.f32 %v183_v51, %v180_v57  ;;  %v254_v22 = vstv %s930_s26  ;;  %v198_v24 = vstv %s933_s2  ;;  %v251_v26 = vmul.f32 %v852_v9, %v250_v12  ;;  %s1013_s20 = sld [smem:[#allocation2 + $0x10b]]  ;;  %s1017_s21 = sld [smem:[#allocation2 + $0x10c]] }
  0x4a   :  { %v127_v52 = vadd.f32 %v126_v42, %v123_v45  ;;  %v244_v25 = vadd.f32 %v243_v8, %v240_v17  ;;  %v138_v29 = vmul.f32 %v972_v13, %v137_v14  ;;  %v141_v30 = vstv %s937_s1  ;;  %s1020_s22 = sld [smem:[#allocation2 + $0x186]]  ;;  %s1025_s23 = sld [smem:[#allocation2 + $0x187]] }
  0x4b   :  { %v188_v16 = vadd.f32 %v187_v58, %v184_v5  ;;  %v258_v31 = vstv %s940_s27  ;;  %v202_v32 = vstv %s949_s30  ;;  %v255_v35 = vmul.f32 %v861_v15, %v254_v22  ;;  %s1027_s24 = sld [smem:[#allocation4 + $0x1]]  ;;  %s1035_s25 = sld [smem:[#allocation2 + $0x188]] }
  0x4c   :  { %v131_v10 = vadd.f32 %v130_v53, %v127_v52  ;;  %v248_v34 = vadd.f32 %v247_v18, %v244_v25  ;;  %v199_v37 = vmul.f32 %v923_v44, %v198_v24  ;;  %v262_v38 = vstv %s956_s6  ;;  %s1040_s26 = sld [smem:[#allocation2 + $0x189]]  ;;  %s1042_s2 = sld [smem:[#allocation2 + $0x200]] }
  0x4d   :  { %v192_v23 = vadd.f32 %v191_v6, %v188_v16  ;;  %v142_v39 = vmul.f32 %v993_v27, %v141_v30  ;;  %v206_v40 = vstv %s959_s7  ;;  %v259_v42 = vmul.f32 %v872_v19, %v258_v31  ;;  %s1046_s1 = sld [smem:[#allocation2 + $0x201]]  ;;  %s1050_s27 = sld [smem:[#allocation2 + $0x202]] }
  0x4e   :  { %v135_v28 = vadd.f32 %v134_v11, %v131_v10  ;;  %v252_v41 = vadd.f32 %v251_v26, %v248_v34  ;;  %v203_v45 = vmul.f32 %v945_v56, %v202_v32  ;;  %v266_v46 = vstv %s965_s8  ;;  %s1052_s28 = sld [smem:[#allocation2 + $0x203]]  ;;  %s1060_s29 = sld [smem:[#allocation2 + $0x18a]] }
  0x4f   :  { %v196_v36 = vadd.f32 %v195_v21, %v192_v23  ;;  %v307_v47 = vstv %s967_s9  ;;  %v263_v49 = vmul.f32 %v877_v20, %v262_v38  ;;  %v270_v50 = vstv %s976_s10  ;;  %s1062_s30 = sld [smem:[#allocation2 + $0x204]]  ;;  %s1066_s6 = sld [smem:[#allocation2 + $0x18b]] }
  0x50   :  { %v139_v43 = vadd.f32 %v138_v29, %v135_v28  ;;  %v256_v48 = vadd.f32 %v255_v35, %v252_v41  ;;  %v308_v51 = vmul.f32 %v307_v47, %v824_v0  ;;  %v310_v53 = vstv %s978_s11  ;;  %s1068_s7 = sld [smem:[#allocation2 + $0x205]]  ;;  %s1075_s8 = sld [smem:[#allocation2 + $0x206]] }
  0x51   :  { %v200_v52 = vadd.f32 %v199_v37, %v196_v36  ;;  %v314_v54 = vstv %s982_s12  ;;  %v318_v55 = vstv %s984_s13  ;;  %v267_v58 = vmul.f32 %v899_v33, %v266_v46  ;;  %s1081_s9 = sld [smem:[#allocation2 + $0x18c]]  ;;  %s1085_s3 = sld [smem:[#allocation2 + $0x207]] }
  0x52   :  { %v260_v57 = vadd.f32 %v259_v42, %v256_v48  ;;  %v311_v59 = vmul.f32 %v831_v1, %v310_v53  ;;  %v315_v60 = vmul.f32 %v840_v2, %v314_v54  ;;  %v145_v61 = vstv %s986_s14  ;;  %s1087_s4 = sld [smem:[#allocation4 + $0x2]]  ;;  %s1092_s10 = sld [smem:[#allocation2 + $0x208]] }
  0x53   :  { %v274_v62 = vstv %s998_s17  ;;  %v322_v63 = vstv %s1000_s18  ;;  %v271_v5 = vmul.f32 %v923_v44, %v270_v50  ;;  %v319_v7 = vmul.f32 %v845_v4, %v318_v55  ;;  %s1100_s11 = sld [smem:[#allocation2 + $0x209]]  ;;  %s1104_s12 = sld [smem:[#allocation2 + $0x20a]] }
  0x54   :  { %v264_v3 = vadd.f32 %v263_v49, %v260_v57  ;;  %v312_v6 = vadd.f32 %v311_v59, %v308_v51  ;;  %v143_v8 = vadd.f32 %v142_v39, %v139_v43  ;;  %v204_v10 = vadd.f32 %v203_v45, %v200_v52  ;;  %s1106_s13 = sld [smem:[#allocation2 + $0x280]]  ;;  %s1109_s14 = sld [smem:[#allocation2 + $0x281]] }
  0x55   :  { %v207_v11 = vmul.f32 %v972_v13, %v206_v40  ;;  %v326_v12 = vstv %s1006_s0  ;;  %v210_v14 = vstv %s1010_s19  ;;  %v323_v18 = vmul.f32 %v852_v9, %v322_v63  ;;  %s1111_s15 = sld [smem:[#allocation2 + $0x282]]  ;;  %s1117_s16 = sld [smem:[#allocation2 + $0x283]] }
  0x56   :  { %v268_v16 = vadd.f32 %v267_v58, %v264_v3  ;;  %v316_v17 = vadd.f32 %v315_v60, %v312_v6  ;;  %v275_v21 = vmul.f32 %v945_v56, %v274_v62  ;;  %v278_v22 = vstv %s1013_s20  ;;  %s1119_s17 = sld [smem:[#allocation2 + $0x284]]  ;;  %s1122_s18 = sld [smem:[#allocation4 + $0x3]] }
  0x57   :  { %v282_v23 = vstv %s1017_s21  ;;  %v330_v24 = vstv %s1020_s22  ;;  %v327_v28 = vmul.f32 %v861_v15, %v326_v12  ;;  %v334_v29 = vstv %s1025_s23  ;;  %s1125_s0 = sld [smem:[#allocation2 + $0x20b]]  ;;  %s1130_s19 = sld [smem:[#allocation2 + $0x285]] }
  0x58   :  { %v272_v25 = vadd.f32 %v271_v5, %v268_v16  ;;  %v320_v26 = vadd.f32 %v319_v7, %v316_v17  ;;  %v146_v30 = vadd.f32 %v145_v61, %v143_v8  ;;  %v208_v31 = vadd.f32 %v207_v11, %v204_v10  ;;  %s1132_s20 = sld [smem:[#allocation2 + $0x20c]]  ;;  %s1137_s21 = sld [smem:[#allocation2 + $0x286]] }
  0x59   :  { %v211_v32 = vmul.f32 %v993_v27, %v210_v14  ;;  %v214_v34 = vstv %s1027_s24  ;;  %v279_v35 = vmul.f32 %v972_v13, %v278_v22  ;;  %v283_v36 = vmul.f32 %v993_v27, %v282_v23  ;;  %s1144_s22 = sld [smem:[#allocation2 + $0x287]]  ;;  %s1152_s23 = sld [smem:[#allocation2 + $0x288]] }
  0x5a   :  { %v324_v37 = vadd.f32 %v323_v18, %v320_v26  ;;  %v331_v38 = vmul.f32 %v872_v19, %v330_v24  ;;  %v335_v39 = vmul.f32 %v877_v20, %v334_v29  ;;  %v338_v40 = vstv %s1035_s25  ;;  %s1156_s24 = sld [smem:[#allocation4 + $0x4]]  ;;  %s1161_s25 = sld [smem:[#allocation2 + $0x289]] }
  0x5b   :  { %v342_v41 = vstv %s1040_s26  ;;  %v379_v42 = vstv %s1042_s2  ;;  %v276_v43 = vadd.f32 %v275_v21, %v272_v25  ;;  %v382_v47 = vstv %s1046_s1  ;;  %s1167_s26 = sld [smem:[#allocation2 + $0x28a]]  ;;  %s674_s2 = sld [smem:[#allocation2 + $0x28b]] }
  0x5c   :  { %v328_v45 = vadd.f32 %v327_v28, %v324_v37  ;;  %v380_v46 = vmul.f32 %v379_v42, %v824_v0  ;;  %v212_v48 = vadd.f32 %v211_v32, %v208_v31  ;;  %v383_v49 = vmul.f32 %v831_v1, %v382_v47  ;;  %s675_s1 = sld [smem:[#allocation2 + $0x28c]] }
  0x5d   :  { %v386_v50 = vstv %s1050_s27  ;;  %v390_v51 = vstv %s1052_s28  ;;  %v339_v53 = vmul.f32 %v899_v33, %v338_v40  ;;  %v343_v54 = vmul.f32 %v923_v44, %v342_v41  ;;  %s676_s27 = sld [smem:[#allocation4 + $0x5]]  ;;  %s153_s28 = sld [smem:[#allocation6]] }
  0x5e   :  { %v332_v52 = vadd.f32 %v331_v38, %v328_v45  ;;  %v387_v55 = vmul.f32 %v840_v2, %v386_v50  ;;  %v346_v57 = vstv %s1060_s29  ;;  %v384_v58 = vadd.f32 %v383_v49, %v380_v46  ;;  %s606_s29 = sld [smem:[#allocation6 + $0x1]] }
  0x5f   :  { %v391_v59 = vmul.f32 %v845_v4, %v390_v51  ;;  %v394_v60 = vstv %s1062_s30  ;;  %v280_v61 = vadd.f32 %v279_v35, %v276_v43  ;;  %v350_v63 = vstv %s1066_s6  ;;  %s589_s30 = sld [smem:[#allocation6 + $0x80]]  ;;  %s607_s6 = sld [smem:[#allocation6 + $0x81]] }
  0x60   :  { %v336_v62 = vadd.f32 %v335_v39, %v332_v52  ;;  %v398_v3 = vstv %s1068_s7  ;;  %v588_v5 = vmul.f32 -1.442695, %v146_v30  ;;  %v388_v6 = vadd.f32 %v387_v55, %v384_v58  ;;  %s1183_s7 = sld [smem:[#allocation6 + $0x100]] }
  0x61   :  { %v395_v7 = vmul.f32 %v852_v9, %v394_v60  ;;  %v215_v8 = vadd.f32 %v214_v34, %v212_v48  ;;  %v347_v11 = vmul.f32 %v945_v56, %v346_v57  ;;  %v402_v12 = vstv %s1075_s8  ;;  %s1185_s8 = sld [smem:[#allocation6 + $0x101]] }
  0x62   :  { %v340_v10 = vadd.f32 %v339_v53, %v336_v62  ;;  %v351_v14 = vmul.f32 %v972_v13, %v350_v63  ;;  %v392_v16 = vadd.f32 %v391_v59, %v388_v6  ;;  %v399_v17 = vmul.f32 %v861_v15, %v398_v3 }
  0x63   :  { %v284_v18 = vadd.f32 %v283_v36, %v280_v61  ;;  %v354_v22 = vstv %s1081_s9  ;;  %v406_v23 = vstv %s1085_s3  ;;  %v286_v24 = vstv %s1087_s4  ;;  %s1187_s9 = sld [smem:[#allocation6 + $0x2]] }
  0x64   :  { %v344_v21 = vadd.f32 %v343_v54, %v340_v10  ;;  %v396_v25 = vadd.f32 %v395_v7, %v392_v16  ;;  %v403_v26 = vmul.f32 %v872_v19, %v402_v12  ;;  %v410_v28 = vstv %s1092_s10  ;;  %s1189_s3 = sld [smem:[#allocation6 + $0x82]]  ;;  %s1193_s10 = sld [smem:[#allocation6 + $0x3]] }
  0x65   :  { %689 = vpow2.f32 %v588_v5  ;;  %v605_v29 = vmul.f32 -1.442695, %v215_v8  ;;  %v355_v31 = vmul.f32 %v993_v27, %v354_v22  ;;  %v407_v34 = vmul.f32 %v877_v20, %v406_v23  ;;  %s1191_s4 = sld [smem:[#allocation6 + $0x102]] }
  0x66   :  { %v348_v30 = vadd.f32 %v347_v11, %v344_v21  ;;  %v400_v32 = vadd.f32 %v399_v17, %v396_v25  ;;  %v414_v35 = vstv %s1100_s11  ;;  %v287_v36 = vadd.f32 %v286_v24, %v284_v18  ;;  %s1195_s11 = sld [smem:[#allocation6 + $0x83]] }
  0x67   :  { %v411_v38 = vmul.f32 %v899_v33, %v410_v28  ;;  %v418_v39 = vstv %s1104_s12  ;;  %v451_v41 = vstv %s1106_s13  ;;  %v454_v42 = vstv %s1109_s14  ;;  %s1199_s12 = sld [smem:[#allocation6 + $0x103]]  ;;  %s1203_s13 = sld [smem:[#allocation6 + $0x4]] }
  0x68   :  { %v352_v37 = vadd.f32 %v351_v14, %v348_v30  ;;  %v404_v40 = vadd.f32 %v403_v26, %v400_v32  ;;  %v458_v43 = vstv %s1111_s15  ;;  %v415_v45 = vmul.f32 %v923_v44, %v414_v35  ;;  %s1206_s14 = sld [smem:[#allocation6 + $0x84]] }
  0x69   :  { %v452_v46 = vmul.f32 %v451_v41, %v824_v0  ;;  %v455_v47 = vmul.f32 %v831_v1, %v454_v42  ;;  %v459_v48 = vmul.f32 %v840_v2, %v458_v43  ;;  %v462_v51 = vstv %s1117_s16  ;;  %s1208_s15 = sld [smem:[#allocation6 + $0x104]]  ;;  %s678_s16 = sld [smem:[#allocation6 + $0x5]] }
  0x6a   :  { %v356_v49 = vadd.f32 %v355_v31, %v352_v37  ;;  %v408_v50 = vadd.f32 %v407_v34, %v404_v40  ;;  %v466_v52 = vstv %s1119_s17  ;;  %v358_v53 = vstv %s1122_s18  ;;  %s679_s17 = sld [smem:[#allocation6 + $0x85]] }
  0x6b   :  { %v422_v54 = vstv %s1125_s0  ;;  %v456_v55 = vadd.f32 %v455_v47, %v452_v46  ;;  %v463_v0 = vmul.f32 %v845_v4, %v462_v51  ;;  %691 = vpow2.f32 %v605_v29  ;;  %s680_s18 = sld [smem:[#allocation6 + $0x105]]  ;;  %s522_s0 = sld [smem:[#allocation7]] }
  0x6c   :  { %v412_v57 = vadd.f32 %v411_v38, %v408_v50  ;;  %v419_v1 = vmul.f32 %v945_v56, %v418_v39  ;;  %v470_v2 = vstv %s1130_s19  ;;  %v623_v58 = vmul.f32 -1.442695, %v287_v36  ;;  %s681_s19 = sld [smem:[#allocation7 + $0x1]] }
  0x6d   :  { %v426_v59 = vstv %s1132_s20  ;;  %v460_v60 = vadd.f32 %v459_v48, %v456_v55  ;;  %v467_v61 = vmul.f32 %v852_v9, %v466_v52  ;;  %v359_v62 = vadd.f32 %v358_v53, %v356_v49  ;;  %s682_s20 = sld [smem:[#allocation7 + $0x2]] }
  0x6e   :  { %v416_v63 = vadd.f32 %v415_v45, %v412_v57  ;;  %v423_v3 = vmul.f32 %v972_v13, %v422_v54  ;;  %v474_v5 = vstv %s1137_s21  ;;  %v471_v7 = vmul.f32 %v861_v15, %v470_v2 }
  0x6f   :  { %v690_v4 = vpop.eup %689  ;;  %v464_v6 = vadd.f32 %v463_v0, %v460_v60  ;;  %v427_v10 = vmul.f32 %v993_v27, %v426_v59  ;;  %v478_v11 = vstv %s1144_s22  ;;  %v475_v12 = vmul.f32 %v872_v19, %v474_v5 }
  0x70   :  { %v420_v8 = vadd.f32 %v419_v1, %v416_v63  ;;  %693 = vpow2.f32 %v623_v58  ;;  %v641_v14 = vmul.f32 -1.442695, %v359_v62  ;;  %v482_v17 = vstv %s1152_s23 }
  0x71   :  { %v468_v9 = vadd.f32 %v467_v61, %v464_v6  ;;  %v430_v18 = vstv %s1156_s24  ;;  %v479_v22 = vmul.f32 %v877_v20, %v478_v11  ;;  %v486_v23 = vstv %s1161_s25 }
  0x72   :  { %v424_v16 = vadd.f32 %v423_v3, %v420_v8  ;;  %v483_v25 = vmul.f32 %v899_v33, %v482_v17  ;;  %695 = vpow2.f32 %v641_v14  ;;  %v490_v29 = vstv %s1167_s26 }
  0x73   :  { %v472_v21 = vadd.f32 %v471_v7, %v468_v9  ;;  %v487_v30 = vmul.f32 %v923_v44, %v486_v23  ;;  %v494_v32 = vstv %s674_s2  ;;  %v491_v35 = vmul.f32 %v945_v56, %v490_v29 }
  0x74   :  { %v428_v15 = vadd.f32 %v427_v10, %v424_v16  ;;  %v150_v36 = vadd.f32 1.0, %v690_v4  ;;  %v498_v20 = vstv %s675_s1  ;;  %v495_v39 = vmul.f32 %v972_v13, %v494_v32 }
  0x75   :  { %v476_v24 = vadd.f32 %v475_v12, %v472_v21  ;;  %v692_v26 = vpop.eup %691  ;;  %v499_v41 = vmul.f32 %v993_v27, %v498_v20  ;;  %v502_v45 = vstv %s676_s27  ;;  %v154_v50 = vstv %s153_s28 }
  0x76   :  { %v431_v28 = vadd.f32 %v430_v18, %v428_v15  ;;  %v219_v37 = vadd.f32 1.0, %v692_v26  ;;  %v223_v51 = vstv %s606_s29  ;;  %v157_v53 = vstv %s589_s30 }
  0x77   :  { %v480_v19 = vadd.f32 %v479_v22, %v476_v24  ;;  %v227_v54 = vstv %s607_s6  ;;  %v160_v55 = vstv %s1183_s7  ;;  %v231_v0 = vstv %s1185_s8 }
  0x78   :  { %v659_v31 = vmul.f32 -1.442695, %v431_v28  ;;  %v295_v60 = vstv %s1187_s9  ;;  %v299_v63 = vstv %s1189_s3  ;;  %v303_v3 = vstv %s1191_s4 }
  0x79   :  { %v484_v34 = vadd.f32 %v483_v25, %v480_v19  ;;  %v367_v12 = vstv %s1193_s10  ;;  %v371_v14 = vstv %s1195_s11  ;;  %v375_v16 = vstv %s1199_s12 }
  0x7a   :  { %v694_v33 = vpop.eup %693  ;;  %697 = vpow2.f32 %v659_v31  ;;  %v439_v26 = vstv %s1203_s13  ;;  %v443_v28 = vstv %s1206_s14  ;;  %v447_v29 = vstv %s1208_s15 }
  0x7b   :  { %v488_v38 = vadd.f32 %v487_v30, %v484_v34  ;;  %699 = vrcp.f32 %v150_v36  ;;  %v291_v44 = vadd.f32 1.0, %v694_v33  ;;  %v511_v36 = vstv %s678_s16 }
  0x7c   :  { %701 = vrcp.f32 %v219_v37  ;;  %v696_v43 = vpop.eup %695  ;;  %v515_v20 = vstv %s679_s17  ;;  %v519_v37 = vstv %s680_s18 }
  0x7d   :  { %v492_v40 = vadd.f32 %v491_v35, %v488_v38  ;;  %703 = vrcp.f32 %v291_v44  ;;  %v363_v13 = vadd.f32 1.0, %v696_v43  ;;  %v523_v43 = vstv %s522_s0 }
  0x7f   :  { %v496_v42 = vadd.f32 %v495_v39, %v492_v40  ;;  %705 = vrcp.f32 %v363_v13 }
  0x81   :  { %v500_v56 = vadd.f32 %v499_v41, %v496_v42 }
  0x83   :  { %v503_v46 = vadd.f32 %v502_v45, %v500_v56  ;;  %v526_v45 = vstv %s681_s19  ;;  %v529_v56 = vstv %s682_s20 }
  0x84   :  { %v698_v47 = vpop.eup %697 }
  0x85   :  { %v677_v27 = vmul.f32 -1.442695, %v503_v46  ;;  %v700_v48 = vpop.eup %699  ;;  %v435_v52 = vadd.f32 1.0, %v698_v47 }
  0x86   :  { %v702_v49 = vpop.eup %701  ;;  %v155_v57 = vmul.f32 %v700_v48, %v154_v50  ;;  %v158_v58 = vmul.f32 %v700_v48, %v157_v53  ;;  %v161_v61 = vmul.f32 %v700_v48, %v160_v55 }
  0x87   :  { %707 = vpow2.f32 %v677_v27  ;;  %v224_v1 = vmul.f32 %v702_v49, %v223_v51  ;;  %v704_v2 = vpop.eup %703  ;;  %v228_v59 = vmul.f32 %v702_v49, %v227_v54  ;;  %v232_v62 = vmul.f32 %v702_v49, %v231_v0 }
  0x88   :  { %709 = vrcp.f32 %v435_v52  ;;  %v296_v4 = vmul.f32 %v704_v2, %v295_v60  ;;  %v300_v8 = vmul.f32 %v704_v2, %v299_v63  ;;  %v304_v9 = vmul.f32 %v704_v2, %v303_v3 }
  0x89   :  { %v225_v5 = vadd.f32 %v224_v1, %v155_v57  ;;  %v706_v6 = vpop.eup %705  ;;  %v229_v7 = vadd.f32 %v228_v59, %v158_v58  ;;  %v233_v11 = vadd.f32 %v232_v62, %v161_v61 }
  0x8a   :  { %v368_v22 = vmul.f32 %v706_v6, %v367_v12  ;;  %v372_v15 = vmul.f32 %v706_v6, %v371_v14  ;;  %v376_v24 = vmul.f32 %v706_v6, %v375_v16 }
  0x8b   :  { %v297_v18 = vadd.f32 %v296_v4, %v225_v5  ;;  %v301_v21 = vadd.f32 %v300_v8, %v229_v7  ;;  %v305_v23 = vadd.f32 %v304_v9, %v233_v11 }
  0x8d   :  { %v369_v19 = vadd.f32 %v368_v22, %v297_v18  ;;  %v373_v30 = vadd.f32 %v372_v15, %v301_v21  ;;  %v377_v31 = vadd.f32 %v376_v24, %v305_v23 }
  0x91   :  { %v708_v10 = vpop.eup %707 }
  0x92   :  { %v507_v17 = vadd.f32 1.0, %v708_v10  ;;  %v710_v25 = vpop.eup %709 }
  0x93   :  { %v440_v32 = vmul.f32 %v710_v25, %v439_v26  ;;  %v444_v34 = vmul.f32 %v710_v25, %v443_v28  ;;  %v448_v35 = vmul.f32 %v710_v25, %v447_v29 }
  0x94   :  { %711 = vrcp.f32 %v507_v17 }
  0x95   :  { %v441_v38 = vadd.f32 %v440_v32, %v369_v19  ;;  %v445_v39 = vadd.f32 %v444_v34, %v373_v30  ;;  %v449_v33 = vadd.f32 %v448_v35, %v377_v31 }
  0x9e   :  { %v712_v40 = vpop.eup %711 }
  0x9f   :  { %v512_v41 = vmul.f32 %v712_v40, %v511_v36  ;;  %v516_v44 = vmul.f32 %v712_v40, %v515_v20  ;;  %v520_v42 = vmul.f32 %v712_v40, %v519_v37 }
  0xa1   :  { %v513_v13 = vadd.f32 %v512_v41, %v441_v38  ;;  %v517_v46 = vadd.f32 %v516_v44, %v445_v39  ;;  %v521_v27 = vadd.f32 %v520_v42, %v449_v33 }
  0xa3   :  { %v524_v47 = vadd.f32 %v523_v43, %v513_v13  ;;  %v527_v48 = vadd.f32 %v526_v45, %v517_v46  ;;  %v530_v49 = vadd.f32 %v529_v56, %v521_v27 }
  0xa5   :  { %v531_v50 = vmax.f32 %v524_v47, %v527_v48 }
  0xa7   :  { %v532_v51 = vmax.f32 %v531_v50, %v530_v49 }
  0xa9   :  { %v533_v52 = vsub.f32 %v524_v47, %v532_v51  ;;  %v536_v53 = vsub.f32 %v527_v48, %v532_v51  ;;  %v539_v54 = vsub.f32 %v530_v49, %v532_v51 }
  0xab   :  { %v534_v55 = vmul.f32 1.442695, %v533_v52  ;;  %v537_v0 = vmul.f32 1.442695, %v536_v53  ;;  %v540_v57 = vmul.f32 1.442695, %v539_v54 }
  0xad   :  { %713 = vpow2.f32 %v534_v55 }
  0xae   :  { %715 = vpow2.f32 %v537_v0 }
  0xaf   :  { %717 = vpow2.f32 %v540_v57 }
  0xb7   :  { %v714_v1 = vpop.eup %713 }
  0xb8   :  { %v716_v2 = vpop.eup %715 }
  0xb9   :  { %v718_v58 = vpop.eup %717  ;;  %v542_v59 = vadd.f32 %v716_v2, %v714_v1 }
  0xbb   :  { %v543_v60 = vadd.f32 %v718_v58, %v542_v59 }
  0xbd   :  { %719 = vrcp.f32 %v543_v60 }
  0xc7   :  { %v720_v61 = vpop.eup %719 }
  0xc8   :  { %v545_v62 = vmul.f32 %v720_v61, %v543_v60 }
  0xca   :  { %v546_v63 = vsub.f32 2.0, %v545_v62 }
  0xcc   :  { %v547_v3 = vmul.f32 %v720_v61, %v546_v63 }
  0xce   :  { %v548_v5 = vmul.f32 %v714_v1, %v547_v3  ;;  %v551_v4 = vmul.f32 %v716_v2, %v547_v3  ;;  %v554_v6 = vmul.f32 %v718_v58, %v547_v3 }
  0xd0   :  { %550 = vst.msk [vmem:[%s1230_s5] sm:$0xff] %vm549_vm0, %v548_v5  ;;  %683 = vst.msk [vmem:[%s1230_s5 + $0x8] sm:$0xff] %vm549_vm0, %v551_v4 }
  0xd1   :  { %684 = vst.msk [vmem:[%s1230_s5 + $0x10] sm:$0xff] %vm549_vm0, %v554_v6 }
  0xd2   :  { %561 = vsyncpa [#allocation3], 1 }
  0xd3   :  { %562 = vsyncpa [#allocation5], 1 }
  0xd4   :  { %563 = vsyncpa [#allocation8], 1 }

</bundles_post_ra>
